<compile_context>
chip_gen: v5e
topology: v5e:2x2
jax: 0.10.0
libtpu: 0.0.40
codegen_flags: <defaults>
</compile_context>

<pallas_src>
import jax
import jax.numpy as jnp
import numpy as np
from jax.experimental import pallas as pl
from jax.experimental.pallas import tpu as pltpu


# ----------------------------------------------------------------------------
# Fused per-image kernel (CHW-flat layout: rows = channels, lanes = H*W)
# ----------------------------------------------------------------------------
def _make_kernel(H, W, offsets_full, offsets_s2):
    HW = H * W
    f32, bf16 = jnp.float32, jnp.bfloat16

    def kernel(x_ref, aux_ref, w1t_ref, w2t_ref, wdu_ref, wds_ref,
               wseg_ref, wcls_ref, b1_ref, b2_ref, bd_ref, bseg_ref, bcls_ref,
               cls_ref, seg_ref):
        aux = aux_ref[...]                       # (20, HW) f32 constants

        def shift_mask(a, off, mask_row):
            # a[:, n] -> a[:, n + off], out-of-image lanes zeroed (zero-pad conv).
            if off == 0:
                return a
            rolled = pltpu.roll(a, (-off) % HW, axis=1)      # XLU lane rotate
            return rolled * aux[mask_row:mask_row + 1, :]    # VALU mask mul

        def conv3x3(a, w_taps_ref, offsets, mask_row0):
            # Per-tap accumulate: 9 small MXU matmuls, f32 accumulation.
            acc = None
            for t, off in enumerate(offsets):
                s = shift_mask(a, off, mask_row0 + t)
                term = jnp.dot(w_taps_ref[t], s.astype(bf16),
                               preferred_element_type=f32)
                acc = term if acc is None else acc + term
            return acc

        # ------------- load image: (Cin, H*W) f32, lane-dense ----------------
        x = x_ref[0]

        # ------------- encoder stage 1: 3x3 conv + ReLU ----------------------
        e1 = jnp.maximum(conv3x3(x, w1t_ref, offsets_full, 0) + b1_ref[...],
                         0.0)                                  # (base, HW) f32

        # ------------- 2x2 max pool, kept "expanded" over the 2x2 window -----
        w_even = aux[18:19, :]
        i_even = aux[19:20, :]
        nbr_w = (w_even * pltpu.roll(e1, HW - 1, axis=1)
                 + (1.0 - w_even) * pltpu.roll(e1, 1, axis=1))
        pw = jnp.maximum(e1, nbr_w)
        nbr_h = (i_even * pltpu.roll(pw, HW - W, axis=1)
                 + (1.0 - i_even) * pltpu.roll(pw, W, axis=1))
        p1 = jnp.maximum(pw, nbr_h)          # pooled value replicated per 2x2

        # ------------- bottleneck 3x3 conv (stride-2 taps) + ReLU ------------
        # Output is constant within each 2x2 block -> it IS the nearest-2x
        # upsampled bottleneck activation; no explicit upsample needed.
        up = jnp.maximum(conv3x3(p1, w2t_ref, offsets_s2, 9) + b2_ref[...],
                         0.0)                                  # (c2, HW) f32

        # ------------- decoder: concat(up, skip) via split weights -----------
        d = (conv3x3(up, wdu_ref, offsets_full, 0)
             + conv3x3(e1, wds_ref, offsets_full, 0))
        d1 = jnp.maximum(d + bd_ref[...], 0.0)                 # (base, HW) f32

        # ------------- segmentation head: 1x1 conv, NCHW-ordered output ------
        seg = jnp.dot(wseg_ref[...], d1.astype(bf16),
                      preferred_element_type=f32) + bseg_ref[...]
        seg_ref[0] = seg                                       # (nc, HW) f32

        # ------------- classification head: GAP (folded) + linear, f32 -------
        mix = jnp.dot(wcls_ref[...], up, preferred_element_type=f32)  # (nc,HW)
        cls_ref[0] = jnp.sum(mix, axis=1, keepdims=True) + bcls_ref[...]

    return kernel


# ----------------------------------------------------------------------------
# Wrapper: one fused pallas_call, batch-parallel grid
# ----------------------------------------------------------------------------
def unet_forward(img_nchw, params):
    """forward(img) -> (cls, seg), mirroring Model.forward single_model branch.

    img_nchw: (B, C, H, W) float32 (PyTorch layout)
    returns:  cls (B, num_classes) f32, seg (B, num_classes, H, W) f32
    """
    B, cin, H, W = img_nchw.shape
    HW = H * W
    base = params["w1"].shape[-1]
    c2 = params["w2"].shape[-1]
    nc = params["wseg"].shape[-1]
    f32, bf16 = jnp.float32, jnp.bfloat16

    # Pad the (tiny) input channel dim to a sublane multiple so every matmul
    # has an aligned contraction dim; real-resolution encoders would fold this
    # into the first-layer weights.
    cpad = (-cin) % 8
    cin_p = cin + cpad

    offsets_full = tuple(di * W + dj for di in (-1, 0, 1) for dj in (-1, 0, 1))
    offsets_s2 = tuple(2 * di * W + 2 * dj
                       for di in (-1, 0, 1) for dj in (-1, 0, 1))

    # ---- constant border-mask / parity rows (baked-in numpy constants) ------
    ii = np.arange(HW) // W
    ww = np.arange(HW) % W
    rows = []
    for step in (1, 2):                       # rows 0-8: full-res, 9-17: stride-2
        for di in (-1, 0, 1):
            for dj in (-1, 0, 1):
                rows.append(((ii + step * di >= 0) & (ii + step * di < H)
                             & (ww + step * dj >= 0) & (ww + step * dj < W)
                             ).astype(np.float32))
    rows.append((ww % 2 == 0).astype(np.float32))             # row 18: w even
    rows.append((ii % 2 == 0).astype(np.float32))             # row 19: i even
    aux = jnp.asarray(np.stack(rows, axis=0))                 # (20, HW) f32

    # ---- tiny weight repacking: per-tap (Cout, Cin) matrices, bf16 ----------
    w1p = jnp.pad(params["w1"], ((0, 0), (0, 0), (0, cpad), (0, 0)))
    w1t = jnp.transpose(w1p, (0, 1, 3, 2)).reshape(9, base, cin_p).astype(bf16)
    w2t = jnp.transpose(params["w2"], (0, 1, 3, 2)).reshape(9, c2, base).astype(bf16)
    wdu = jnp.transpose(params["wd"][:, :, :c2, :], (0, 1, 3, 2)
                        ).reshape(9, base, c2).astype(bf16)
    wds = jnp.transpose(params["wd"][:, :, c2:, :], (0, 1, 3, 2)
                        ).reshape(9, base, base).astype(bf16)
    wsegT = params["wseg"].reshape(base, nc).T.astype(bf16)    # (nc, base)
    wclsT = (params["wcls"].T / float(HW)).astype(f32)         # (nc, c2), GAP folded
    b1 = params["b1"].reshape(base, 1).astype(f32)
    b2 = params["b2"].reshape(c2, 1).astype(f32)
    bd = params["bd"].reshape(base, 1).astype(f32)
    bseg = params["bseg"].reshape(nc, 1).astype(f32)
    bcls = params["bcls"].reshape(nc, 1).astype(f32)

    # NCHW -> (B, C, H*W): pure metadata reshape (no transpose / HBM pass),
    # plus the tiny channel pad.
    x = jnp.pad(img_nchw.reshape(B, cin, HW), ((0, 0), (0, cpad), (0, 0)))

    kernel = _make_kernel(H, W, offsets_full, offsets_s2)

    def const_spec(shape):
        if len(shape) == 2:
            return pl.BlockSpec(shape, lambda b: (0, 0))
        return pl.BlockSpec(shape, lambda b: (0, 0, 0))

    cls3, seg_flat = pl.pallas_call(
        kernel,
        grid=(B,),
        out_shape=(jax.ShapeDtypeStruct((B, nc, 1), f32),
                   jax.ShapeDtypeStruct((B, nc, HW), f32)),
        in_specs=[
            pl.BlockSpec((1, cin_p, HW), lambda b: (b, 0, 0)),   # image
            const_spec((20, HW)),                                # masks/parity
            const_spec((9, base, cin_p)),                        # conv1 taps
            const_spec((9, c2, base)),                           # bottleneck taps
            const_spec((9, base, c2)),                           # decoder (up) taps
            const_spec((9, base, base)),                         # decoder (skip) taps
            const_spec((nc, base)),                              # seg 1x1
            const_spec((nc, c2)),                                # cls (GAP-scaled)
            const_spec((base, 1)),
            const_spec((c2, 1)),
            const_spec((base, 1)),
            const_spec((nc, 1)),
            const_spec((nc, 1)),
        ],
        out_specs=(pl.BlockSpec((1, nc, 1), lambda b: (b, 0, 0)),
                   pl.BlockSpec((1, nc, HW), lambda b: (b, 0, 0))),
        compiler_params=pltpu.CompilerParams(
            dimension_semantics=("parallel",)),
    )(x, aux, w1t, w2t, wdu, wds, wsegT, wclsT, b1, b2, bd, bseg, bcls)

    # (B, nc, H*W) is already NCHW-ordered: pure metadata reshapes only.
    return cls3.reshape(B, nc), seg_flat.reshape(B, nc, H, W)


model_forward = jax.jit(unet_forward)


# ----------------------------------------------------------------------------
# Deterministic parameter init (compact UNet standing in for ResNet-UNet)
# ----------------------------------------------------------------------------
def init_params(key, in_ch=3, base=8, num_classes=4):
    ks = jax.random.split(key, 6)
    sc = 0.1
    return {
        # encoder stage 1: in_ch -> base, 3x3 (HWIO)
        "w1": sc * jax.random.normal(ks[0], (3, 3, in_ch, base), jnp.float32),
        "b1": jnp.zeros((base,), jnp.float32),
        # bottleneck: base -> 2*base, 3x3
        "w2": sc * jax.random.normal(ks[1], (3, 3, base, 2 * base), jnp.float32),
        "b2": jnp.zeros((2 * base,), jnp.float32),
        # decoder: concat(up(2*base), skip(base)) -> base, 3x3
        "wd": sc * jax.random.normal(ks[2], (3, 3, 3 * base, base), jnp.float32),
        "bd": jnp.zeros((base,), jnp.float32),
        # segmentation head: 1x1 conv -> num_classes
        "wseg": sc * jax.random.normal(ks[3], (1, 1, base, num_classes), jnp.float32),
        "bseg": jnp.zeros((num_classes,), jnp.float32),
        # classification head: GAP(bottleneck) -> linear -> num_classes
        "wcls": sc * jax.random.normal(ks[4], (2 * base, num_classes), jnp.float32),
        "bcls": jnp.zeros((num_classes,), jnp.float32),
    }


if __name__ == "__main__":
    key = jax.random.PRNGKey(0)
    k_param, k_img = jax.random.split(key)

    B, C, H, W = 2, 3, 16, 16
    num_classes = 4

    params = init_params(k_param, in_ch=C, base=8, num_classes=num_classes)
    img = jax.random.normal(k_img, (B, C, H, W), jnp.float32)

    cls, seg = model_forward(img, params)
    jax.block_until_ready((cls, seg))

    assert cls.shape == (B, num_classes), cls.shape
    assert seg.shape == (B, num_classes, H, W), seg.shape
    assert bool(jnp.all(jnp.isfinite(cls))) and bool(jnp.all(jnp.isfinite(seg)))
    print("KERNEL_OK")
</pallas_src>

<mosaic_0001>
module attributes {stable_mosaic.version = 11 : i64} {
  func.func @kernel(%arg0: i32, %arg1: memref<1x8x256xf32, #tpu.memory_space<vmem>>, %arg2: memref<20x256xf32, #tpu.memory_space<vmem>>, %arg3: memref<9x8x8xbf16, #tpu.memory_space<vmem>>, %arg4: memref<9x16x8xbf16, #tpu.memory_space<vmem>>, %arg5: memref<9x8x16xbf16, #tpu.memory_space<vmem>>, %arg6: memref<9x8x8xbf16, #tpu.memory_space<vmem>>, %arg7: memref<4x8xbf16, #tpu.memory_space<vmem>>, %arg8: memref<4x16xf32, #tpu.memory_space<vmem>>, %arg9: memref<8x1xf32, #tpu.memory_space<vmem>>, %arg10: memref<16x1xf32, #tpu.memory_space<vmem>>, %arg11: memref<8x1xf32, #tpu.memory_space<vmem>>, %arg12: memref<4x1xf32, #tpu.memory_space<vmem>>, %arg13: memref<4x1xf32, #tpu.memory_space<vmem>>, %arg14: memref<1x4x1xf32, #tpu.memory_space<vmem>>, %arg15: memref<1x4x256xf32, #tpu.memory_space<vmem>>) attributes {dimension_semantics = [#tpu.dimension_semantics<parallel>], iteration_bounds = array<i64: 2>, scalar_prefetch = 0 : i64, scratch_operands = 0 : i64, tpu.core_type = #tpu.core_type<tc>, window_params = [{transform_indices = @transform_0, window_bounds = array<i64: 1, 8, 256>}, {pipeline_mode = #tpu.pipeline_mode<synchronous>, transform_indices = @transform_1, window_bounds = array<i64: 20, 256>}, {pipeline_mode = #tpu.pipeline_mode<synchronous>, transform_indices = @transform_2, window_bounds = array<i64: 9, 8, 8>}, {pipeline_mode = #tpu.pipeline_mode<synchronous>, transform_indices = @transform_3, window_bounds = array<i64: 9, 16, 8>}, {pipeline_mode = #tpu.pipeline_mode<synchronous>, transform_indices = @transform_4, window_bounds = array<i64: 9, 8, 16>}, {pipeline_mode = #tpu.pipeline_mode<synchronous>, transform_indices = @transform_5, window_bounds = array<i64: 9, 8, 8>}, {pipeline_mode = #tpu.pipeline_mode<synchronous>, transform_indices = @transform_6, window_bounds = array<i64: 4, 8>}, {pipeline_mode = #tpu.pipeline_mode<synchronous>, transform_indices = @transform_7, window_bounds = array<i64: 4, 16>}, {pipeline_mode = #tpu.pipeline_mode<synchronous>, transform_indices = @transform_8, window_bounds = array<i64: 8, 1>}, {pipeline_mode = #tpu.pipeline_mode<synchronous>, transform_indices = @transform_9, window_bounds = array<i64: 16, 1>}, {pipeline_mode = #tpu.pipeline_mode<synchronous>, transform_indices = @transform_10, window_bounds = array<i64: 8, 1>}, {pipeline_mode = #tpu.pipeline_mode<synchronous>, transform_indices = @transform_11, window_bounds = array<i64: 4, 1>}, {pipeline_mode = #tpu.pipeline_mode<synchronous>, transform_indices = @transform_12, window_bounds = array<i64: 4, 1>}, {transform_indices = @transform_13, window_bounds = array<i64: 1, 4, 1>}, {transform_indices = @transform_14, window_bounds = array<i64: 1, 4, 256>}]} {
    %c0 = arith.constant 0 : index
    %c0_0 = arith.constant 0 : index
    %0 = vector.load %arg2[%c0, %c0_0] : memref<20x256xf32, #tpu.memory_space<vmem>>, vector<20x256xf32>
    %c0_1 = arith.constant 0 : index
    %c0_2 = arith.constant 0 : index
    %c0_3 = arith.constant 0 : index
    %1 = vector.load %arg1[%c0_1, %c0_2, %c0_3] : memref<1x8x256xf32, #tpu.memory_space<vmem>>, vector<1x8x256xf32>
    %2 = vector.shape_cast %1 : vector<1x8x256xf32> to vector<8x256xf32>
    %c17_i32 = arith.constant 17 : i32
    %3 = tpu.dynamic_rotate %2 by %c17_i32 dim 1 : vector<8x256xf32>, i32 -> vector<8x256xf32>
    %4 = vector.extract_strided_slice %0 {offsets = [0, 0], sizes = [1, 256], strides = [1, 1]} : vector<20x256xf32> to vector<1x256xf32>
    %5 = vector.broadcast %4 : vector<1x256xf32> to vector<8x256xf32>
    %6 = arith.mulf %3, %5 : vector<8x256xf32>
    %c0_4 = arith.constant 0 : index
    %c0_5 = arith.constant 0 : index
    %c0_6 = arith.constant 0 : index
    %7 = vector.load %arg3[%c0_4, %c0_5, %c0_6] : memref<9x8x8xbf16, #tpu.memory_space<vmem>>, vector<1x8x8xbf16>
    %8 = vector.shape_cast %7 : vector<1x8x8xbf16> to vector<8x8xbf16>
    %9 = arith.truncf %6 : vector<8x256xf32> to vector<8x256xbf16>
    %cst = arith.constant dense<0.000000e+00> : vector<8x256xf32>
    %10 = tpu.matmul %8, %9, %cst {dimension_numbers = #tpu.dot_dimension_numbers<[1], [0], [0], [1], [0, 0, 1, 1], [], []>} : vector<8x8xbf16>, vector<8x256xbf16>, vector<8x256xf32> -> vector<8x256xf32>
    %c16_i32 = arith.constant 16 : i32
    %11 = tpu.dynamic_rotate %2 by %c16_i32 dim 1 : vector<8x256xf32>, i32 -> vector<8x256xf32>
    %12 = vector.extract_strided_slice %0 {offsets = [1, 0], sizes = [1, 256], strides = [1, 1]} : vector<20x256xf32> to vector<1x256xf32>
    %13 = vector.broadcast %12 : vector<1x256xf32> to vector<8x256xf32>
    %14 = arith.mulf %11, %13 : vector<8x256xf32>
    %c1 = arith.constant 1 : index
    %c0_7 = arith.constant 0 : index
    %c0_8 = arith.constant 0 : index
    %15 = vector.load %arg3[%c1, %c0_7, %c0_8] : memref<9x8x8xbf16, #tpu.memory_space<vmem>>, vector<1x8x8xbf16>
    %16 = vector.shape_cast %15 : vector<1x8x8xbf16> to vector<8x8xbf16>
    %17 = arith.truncf %14 : vector<8x256xf32> to vector<8x256xbf16>
    %cst_9 = arith.constant dense<0.000000e+00> : vector<8x256xf32>
    %18 = tpu.matmul %16, %17, %cst_9 {dimension_numbers = #tpu.dot_dimension_numbers<[1], [0], [0], [1], [0, 0, 1, 1], [], []>} : vector<8x8xbf16>, vector<8x256xbf16>, vector<8x256xf32> -> vector<8x256xf32>
    %19 = arith.addf %10, %18 : vector<8x256xf32>
    %c15_i32 = arith.constant 15 : i32
    %20 = tpu.dynamic_rotate %2 by %c15_i32 dim 1 : vector<8x256xf32>, i32 -> vector<8x256xf32>
    %21 = vector.extract_strided_slice %0 {offsets = [2, 0], sizes = [1, 256], strides = [1, 1]} : vector<20x256xf32> to vector<1x256xf32>
    %22 = vector.broadcast %21 : vector<1x256xf32> to vector<8x256xf32>
    %23 = arith.mulf %20, %22 : vector<8x256xf32>
    %c2 = arith.constant 2 : index
    %c0_10 = arith.constant 0 : index
    %c0_11 = arith.constant 0 : index
    %24 = vector.load %arg3[%c2, %c0_10, %c0_11] : memref<9x8x8xbf16, #tpu.memory_space<vmem>>, vector<1x8x8xbf16>
    %25 = vector.shape_cast %24 : vector<1x8x8xbf16> to vector<8x8xbf16>
    %26 = arith.truncf %23 : vector<8x256xf32> to vector<8x256xbf16>
    %cst_12 = arith.constant dense<0.000000e+00> : vector<8x256xf32>
    %27 = tpu.matmul %25, %26, %cst_12 {dimension_numbers = #tpu.dot_dimension_numbers<[1], [0], [0], [1], [0, 0, 1, 1], [], []>} : vector<8x8xbf16>, vector<8x256xbf16>, vector<8x256xf32> -> vector<8x256xf32>
    %28 = arith.addf %19, %27 : vector<8x256xf32>
    %c1_i32 = arith.constant 1 : i32
    %29 = tpu.dynamic_rotate %2 by %c1_i32 dim 1 : vector<8x256xf32>, i32 -> vector<8x256xf32>
    %30 = vector.extract_strided_slice %0 {offsets = [3, 0], sizes = [1, 256], strides = [1, 1]} : vector<20x256xf32> to vector<1x256xf32>
    %31 = vector.broadcast %30 : vector<1x256xf32> to vector<8x256xf32>
    %32 = arith.mulf %29, %31 : vector<8x256xf32>
    %c3 = arith.constant 3 : index
    %c0_13 = arith.constant 0 : index
    %c0_14 = arith.constant 0 : index
    %33 = vector.load %arg3[%c3, %c0_13, %c0_14] : memref<9x8x8xbf16, #tpu.memory_space<vmem>>, vector<1x8x8xbf16>
    %34 = vector.shape_cast %33 : vector<1x8x8xbf16> to vector<8x8xbf16>
    %35 = arith.truncf %32 : vector<8x256xf32> to vector<8x256xbf16>
    %cst_15 = arith.constant dense<0.000000e+00> : vector<8x256xf32>
    %36 = tpu.matmul %34, %35, %cst_15 {dimension_numbers = #tpu.dot_dimension_numbers<[1], [0], [0], [1], [0, 0, 1, 1], [], []>} : vector<8x8xbf16>, vector<8x256xbf16>, vector<8x256xf32> -> vector<8x256xf32>
    %37 = arith.addf %28, %36 : vector<8x256xf32>
    %c4 = arith.constant 4 : index
    %c0_16 = arith.constant 0 : index
    %c0_17 = arith.constant 0 : index
    %38 = vector.load %arg3[%c4, %c0_16, %c0_17] : memref<9x8x8xbf16, #tpu.memory_space<vmem>>, vector<1x8x8xbf16>
    %39 = vector.shape_cast %38 : vector<1x8x8xbf16> to vector<8x8xbf16>
    %40 = arith.truncf %2 : vector<8x256xf32> to vector<8x256xbf16>
    %cst_18 = arith.constant dense<0.000000e+00> : vector<8x256xf32>
    %41 = tpu.matmul %39, %40, %cst_18 {dimension_numbers = #tpu.dot_dimension_numbers<[1], [0], [0], [1], [0, 0, 1, 1], [], []>} : vector<8x8xbf16>, vector<8x256xbf16>, vector<8x256xf32> -> vector<8x256xf32>
    %42 = arith.addf %37, %41 : vector<8x256xf32>
    %c255_i32 = arith.constant 255 : i32
    %43 = tpu.dynamic_rotate %2 by %c255_i32 dim 1 : vector<8x256xf32>, i32 -> vector<8x256xf32>
    %44 = vector.extract_strided_slice %0 {offsets = [5, 0], sizes = [1, 256], strides = [1, 1]} : vector<20x256xf32> to vector<1x256xf32>
    %45 = vector.broadcast %44 : vector<1x256xf32> to vector<8x256xf32>
    %46 = arith.mulf %43, %45 : vector<8x256xf32>
    %c5 = arith.constant 5 : index
    %c0_19 = arith.constant 0 : index
    %c0_20 = arith.constant 0 : index
    %47 = vector.load %arg3[%c5, %c0_19, %c0_20] : memref<9x8x8xbf16, #tpu.memory_space<vmem>>, vector<1x8x8xbf16>
    %48 = vector.shape_cast %47 : vector<1x8x8xbf16> to vector<8x8xbf16>
    %49 = arith.truncf %46 : vector<8x256xf32> to vector<8x256xbf16>
    %cst_21 = arith.constant dense<0.000000e+00> : vector<8x256xf32>
    %50 = tpu.matmul %48, %49, %cst_21 {dimension_numbers = #tpu.dot_dimension_numbers<[1], [0], [0], [1], [0, 0, 1, 1], [], []>} : vector<8x8xbf16>, vector<8x256xbf16>, vector<8x256xf32> -> vector<8x256xf32>
    %51 = arith.addf %42, %50 : vector<8x256xf32>
    %c241_i32 = arith.constant 241 : i32
    %52 = tpu.dynamic_rotate %2 by %c241_i32 dim 1 : vector<8x256xf32>, i32 -> vector<8x256xf32>
    %53 = vector.extract_strided_slice %0 {offsets = [6, 0], sizes = [1, 256], strides = [1, 1]} : vector<20x256xf32> to vector<1x256xf32>
    %54 = vector.broadcast %53 : vector<1x256xf32> to vector<8x256xf32>
    %55 = arith.mulf %52, %54 : vector<8x256xf32>
    %c6 = arith.constant 6 : index
    %c0_22 = arith.constant 0 : index
    %c0_23 = arith.constant 0 : index
    %56 = vector.load %arg3[%c6, %c0_22, %c0_23] : memref<9x8x8xbf16, #tpu.memory_space<vmem>>, vector<1x8x8xbf16>
    %57 = vector.shape_cast %56 : vector<1x8x8xbf16> to vector<8x8xbf16>
    %58 = arith.truncf %55 : vector<8x256xf32> to vector<8x256xbf16>
    %cst_24 = arith.constant dense<0.000000e+00> : vector<8x256xf32>
    %59 = tpu.matmul %57, %58, %cst_24 {dimension_numbers = #tpu.dot_dimension_numbers<[1], [0], [0], [1], [0, 0, 1, 1], [], []>} : vector<8x8xbf16>, vector<8x256xbf16>, vector<8x256xf32> -> vector<8x256xf32>
    %60 = arith.addf %51, %59 : vector<8x256xf32>
    %c240_i32 = arith.constant 240 : i32
    %61 = tpu.dynamic_rotate %2 by %c240_i32 dim 1 : vector<8x256xf32>, i32 -> vector<8x256xf32>
    %62 = vector.extract_strided_slice %0 {offsets = [7, 0], sizes = [1, 256], strides = [1, 1]} : vector<20x256xf32> to vector<1x256xf32>
    %63 = vector.broadcast %62 : vector<1x256xf32> to vector<8x256xf32>
    %64 = arith.mulf %61, %63 : vector<8x256xf32>
    %c7 = arith.constant 7 : index
    %c0_25 = arith.constant 0 : index
    %c0_26 = arith.constant 0 : index
    %65 = vector.load %arg3[%c7, %c0_25, %c0_26] : memref<9x8x8xbf16, #tpu.memory_space<vmem>>, vector<1x8x8xbf16>
    %66 = vector.shape_cast %65 : vector<1x8x8xbf16> to vector<8x8xbf16>
    %67 = arith.truncf %64 : vector<8x256xf32> to vector<8x256xbf16>
    %cst_27 = arith.constant dense<0.000000e+00> : vector<8x256xf32>
    %68 = tpu.matmul %66, %67, %cst_27 {dimension_numbers = #tpu.dot_dimension_numbers<[1], [0], [0], [1], [0, 0, 1, 1], [], []>} : vector<8x8xbf16>, vector<8x256xbf16>, vector<8x256xf32> -> vector<8x256xf32>
    %69 = arith.addf %60, %68 : vector<8x256xf32>
    %c239_i32 = arith.constant 239 : i32
    %70 = tpu.dynamic_rotate %2 by %c239_i32 dim 1 : vector<8x256xf32>, i32 -> vector<8x256xf32>
    %71 = vector.extract_strided_slice %0 {offsets = [8, 0], sizes = [1, 256], strides = [1, 1]} : vector<20x256xf32> to vector<1x256xf32>
    %72 = vector.broadcast %71 : vector<1x256xf32> to vector<8x256xf32>
    %73 = arith.mulf %70, %72 : vector<8x256xf32>
    %c8 = arith.constant 8 : index
    %c0_28 = arith.constant 0 : index
    %c0_29 = arith.constant 0 : index
    %74 = vector.load %arg3[%c8, %c0_28, %c0_29] : memref<9x8x8xbf16, #tpu.memory_space<vmem>>, vector<1x8x8xbf16>
    %75 = vector.shape_cast %74 : vector<1x8x8xbf16> to vector<8x8xbf16>
    %76 = arith.truncf %73 : vector<8x256xf32> to vector<8x256xbf16>
    %cst_30 = arith.constant dense<0.000000e+00> : vector<8x256xf32>
    %77 = tpu.matmul %75, %76, %cst_30 {dimension_numbers = #tpu.dot_dimension_numbers<[1], [0], [0], [1], [0, 0, 1, 1], [], []>} : vector<8x8xbf16>, vector<8x256xbf16>, vector<8x256xf32> -> vector<8x256xf32>
    %78 = arith.addf %69, %77 : vector<8x256xf32>
    %c0_31 = arith.constant 0 : index
    %c0_32 = arith.constant 0 : index
    %79 = vector.load %arg9[%c0_31, %c0_32] : memref<8x1xf32, #tpu.memory_space<vmem>>, vector<8x1xf32>
    %80 = vector.broadcast %79 : vector<8x1xf32> to vector<8x256xf32>
    %81 = arith.addf %78, %80 : vector<8x256xf32>
    %cst_33 = arith.constant 0.000000e+00 : f32
    %82 = vector.broadcast %cst_33 : f32 to vector<8x256xf32>
    %83 = arith.maximumf %81, %82 : vector<8x256xf32>
    %84 = vector.extract_strided_slice %0 {offsets = [18, 0], sizes = [1, 256], strides = [1, 1]} : vector<20x256xf32> to vector<1x256xf32>
    %85 = vector.extract_strided_slice %0 {offsets = [19, 0], sizes = [1, 256], strides = [1, 1]} : vector<20x256xf32> to vector<1x256xf32>
    %c255_i32_34 = arith.constant 255 : i32
    %86 = tpu.dynamic_rotate %83 by %c255_i32_34 dim 1 : vector<8x256xf32>, i32 -> vector<8x256xf32>
    %87 = vector.broadcast %84 : vector<1x256xf32> to vector<8x256xf32>
    %88 = arith.mulf %87, %86 : vector<8x256xf32>
    %cst_35 = arith.constant 1.000000e+00 : f32
    %89 = vector.broadcast %cst_35 : f32 to vector<1x256xf32>
    %90 = arith.subf %89, %84 : vector<1x256xf32>
    %c1_i32_36 = arith.constant 1 : i32
    %91 = tpu.dynamic_rotate %83 by %c1_i32_36 dim 1 : vector<8x256xf32>, i32 -> vector<8x256xf32>
    %92 = vector.broadcast %90 : vector<1x256xf32> to vector<8x256xf32>
    %93 = arith.mulf %92, %91 : vector<8x256xf32>
    %94 = arith.addf %88, %93 : vector<8x256xf32>
    %95 = arith.maximumf %83, %94 : vector<8x256xf32>
    %c240_i32_37 = arith.constant 240 : i32
    %96 = tpu.dynamic_rotate %95 by %c240_i32_37 dim 1 : vector<8x256xf32>, i32 -> vector<8x256xf32>
    %97 = vector.broadcast %85 : vector<1x256xf32> to vector<8x256xf32>
    %98 = arith.mulf %97, %96 : vector<8x256xf32>
    %cst_38 = arith.constant 1.000000e+00 : f32
    %99 = vector.broadcast %cst_38 : f32 to vector<1x256xf32>
    %100 = arith.subf %99, %85 : vector<1x256xf32>
    %c16_i32_39 = arith.constant 16 : i32
    %101 = tpu.dynamic_rotate %95 by %c16_i32_39 dim 1 : vector<8x256xf32>, i32 -> vector<8x256xf32>
    %102 = vector.broadcast %100 : vector<1x256xf32> to vector<8x256xf32>
    %103 = arith.mulf %102, %101 : vector<8x256xf32>
    %104 = arith.addf %98, %103 : vector<8x256xf32>
    %105 = arith.maximumf %95, %104 : vector<8x256xf32>
    %c34_i32 = arith.constant 34 : i32
    %106 = tpu.dynamic_rotate %105 by %c34_i32 dim 1 : vector<8x256xf32>, i32 -> vector<8x256xf32>
    %107 = vector.extract_strided_slice %0 {offsets = [9, 0], sizes = [1, 256], strides = [1, 1]} : vector<20x256xf32> to vector<1x256xf32>
    %108 = vector.broadcast %107 : vector<1x256xf32> to vector<8x256xf32>
    %109 = arith.mulf %106, %108 : vector<8x256xf32>
    %c0_40 = arith.constant 0 : index
    %c0_41 = arith.constant 0 : index
    %c0_42 = arith.constant 0 : index
    %110 = vector.load %arg4[%c0_40, %c0_41, %c0_42] : memref<9x16x8xbf16, #tpu.memory_space<vmem>>, vector<1x16x8xbf16>
    %111 = vector.shape_cast %110 : vector<1x16x8xbf16> to vector<16x8xbf16>
    %112 = arith.truncf %109 : vector<8x256xf32> to vector<8x256xbf16>
    %cst_43 = arith.constant dense<0.000000e+00> : vector<16x256xf32>
    %113 = tpu.matmul %111, %112, %cst_43 {dimension_numbers = #tpu.dot_dimension_numbers<[1], [0], [0], [1], [0, 0, 1, 1], [], []>} : vector<16x8xbf16>, vector<8x256xbf16>, vector<16x256xf32> -> vector<16x256xf32>
    %c32_i32 = arith.constant 32 : i32
    %114 = tpu.dynamic_rotate %105 by %c32_i32 dim 1 : vector<8x256xf32>, i32 -> vector<8x256xf32>
    %115 = vector.extract_strided_slice %0 {offsets = [10, 0], sizes = [1, 256], strides = [1, 1]} : vector<20x256xf32> to vector<1x256xf32>
    %116 = vector.broadcast %115 : vector<1x256xf32> to vector<8x256xf32>
    %117 = arith.mulf %114, %116 : vector<8x256xf32>
    %c1_44 = arith.constant 1 : index
    %c0_45 = arith.constant 0 : index
    %c0_46 = arith.constant 0 : index
    %118 = vector.load %arg4[%c1_44, %c0_45, %c0_46] : memref<9x16x8xbf16, #tpu.memory_space<vmem>>, vector<1x16x8xbf16>
    %119 = vector.shape_cast %118 : vector<1x16x8xbf16> to vector<16x8xbf16>
    %120 = arith.truncf %117 : vector<8x256xf32> to vector<8x256xbf16>
    %cst_47 = arith.constant dense<0.000000e+00> : vector<16x256xf32>
    %121 = tpu.matmul %119, %120, %cst_47 {dimension_numbers = #tpu.dot_dimension_numbers<[1], [0], [0], [1], [0, 0, 1, 1], [], []>} : vector<16x8xbf16>, vector<8x256xbf16>, vector<16x256xf32> -> vector<16x256xf32>
    %122 = arith.addf %113, %121 : vector<16x256xf32>
    %c30_i32 = arith.constant 30 : i32
    %123 = tpu.dynamic_rotate %105 by %c30_i32 dim 1 : vector<8x256xf32>, i32 -> vector<8x256xf32>
    %124 = vector.extract_strided_slice %0 {offsets = [11, 0], sizes = [1, 256], strides = [1, 1]} : vector<20x256xf32> to vector<1x256xf32>
    %125 = vector.broadcast %124 : vector<1x256xf32> to vector<8x256xf32>
    %126 = arith.mulf %123, %125 : vector<8x256xf32>
    %c2_48 = arith.constant 2 : index
    %c0_49 = arith.constant 0 : index
    %c0_50 = arith.constant 0 : index
    %127 = vector.load %arg4[%c2_48, %c0_49, %c0_50] : memref<9x16x8xbf16, #tpu.memory_space<vmem>>, vector<1x16x8xbf16>
    %128 = vector.shape_cast %127 : vector<1x16x8xbf16> to vector<16x8xbf16>
    %129 = arith.truncf %126 : vector<8x256xf32> to vector<8x256xbf16>
    %cst_51 = arith.constant dense<0.000000e+00> : vector<16x256xf32>
    %130 = tpu.matmul %128, %129, %cst_51 {dimension_numbers = #tpu.dot_dimension_numbers<[1], [0], [0], [1], [0, 0, 1, 1], [], []>} : vector<16x8xbf16>, vector<8x256xbf16>, vector<16x256xf32> -> vector<16x256xf32>
    %131 = arith.addf %122, %130 : vector<16x256xf32>
    %c2_i32 = arith.constant 2 : i32
    %132 = tpu.dynamic_rotate %105 by %c2_i32 dim 1 : vector<8x256xf32>, i32 -> vector<8x256xf32>
    %133 = vector.extract_strided_slice %0 {offsets = [12, 0], sizes = [1, 256], strides = [1, 1]} : vector<20x256xf32> to vector<1x256xf32>
    %134 = vector.broadcast %133 : vector<1x256xf32> to vector<8x256xf32>
    %135 = arith.mulf %132, %134 : vector<8x256xf32>
    %c3_52 = arith.constant 3 : index
    %c0_53 = arith.constant 0 : index
    %c0_54 = arith.constant 0 : index
    %136 = vector.load %arg4[%c3_52, %c0_53, %c0_54] : memref<9x16x8xbf16, #tpu.memory_space<vmem>>, vector<1x16x8xbf16>
    %137 = vector.shape_cast %136 : vector<1x16x8xbf16> to vector<16x8xbf16>
    %138 = arith.truncf %135 : vector<8x256xf32> to vector<8x256xbf16>
    %cst_55 = arith.constant dense<0.000000e+00> : vector<16x256xf32>
    %139 = tpu.matmul %137, %138, %cst_55 {dimension_numbers = #tpu.dot_dimension_numbers<[1], [0], [0], [1], [0, 0, 1, 1], [], []>} : vector<16x8xbf16>, vector<8x256xbf16>, vector<16x256xf32> -> vector<16x256xf32>
    %140 = arith.addf %131, %139 : vector<16x256xf32>
    %c4_56 = arith.constant 4 : index
    %c0_57 = arith.constant 0 : index
    %c0_58 = arith.constant 0 : index
    %141 = vector.load %arg4[%c4_56, %c0_57, %c0_58] : memref<9x16x8xbf16, #tpu.memory_space<vmem>>, vector<1x16x8xbf16>
    %142 = vector.shape_cast %141 : vector<1x16x8xbf16> to vector<16x8xbf16>
    %143 = arith.truncf %105 : vector<8x256xf32> to vector<8x256xbf16>
    %cst_59 = arith.constant dense<0.000000e+00> : vector<16x256xf32>
    %144 = tpu.matmul %142, %143, %cst_59 {dimension_numbers = #tpu.dot_dimension_numbers<[1], [0], [0], [1], [0, 0, 1, 1], [], []>} : vector<16x8xbf16>, vector<8x256xbf16>, vector<16x256xf32> -> vector<16x256xf32>
    %145 = arith.addf %140, %144 : vector<16x256xf32>
    %c254_i32 = arith.constant 254 : i32
    %146 = tpu.dynamic_rotate %105 by %c254_i32 dim 1 : vector<8x256xf32>, i32 -> vector<8x256xf32>
    %147 = vector.extract_strided_slice %0 {offsets = [14, 0], sizes = [1, 256], strides = [1, 1]} : vector<20x256xf32> to vector<1x256xf32>
    %148 = vector.broadcast %147 : vector<1x256xf32> to vector<8x256xf32>
    %149 = arith.mulf %146, %148 : vector<8x256xf32>
    %c5_60 = arith.constant 5 : index
    %c0_61 = arith.constant 0 : index
    %c0_62 = arith.constant 0 : index
    %150 = vector.load %arg4[%c5_60, %c0_61, %c0_62] : memref<9x16x8xbf16, #tpu.memory_space<vmem>>, vector<1x16x8xbf16>
    %151 = vector.shape_cast %150 : vector<1x16x8xbf16> to vector<16x8xbf16>
    %152 = arith.truncf %149 : vector<8x256xf32> to vector<8x256xbf16>
    %cst_63 = arith.constant dense<0.000000e+00> : vector<16x256xf32>
    %153 = tpu.matmul %151, %152, %cst_63 {dimension_numbers = #tpu.dot_dimension_numbers<[1], [0], [0], [1], [0, 0, 1, 1], [], []>} : vector<16x8xbf16>, vector<8x256xbf16>, vector<16x256xf32> -> vector<16x256xf32>
    %154 = arith.addf %145, %153 : vector<16x256xf32>
    %c226_i32 = arith.constant 226 : i32
    %155 = tpu.dynamic_rotate %105 by %c226_i32 dim 1 : vector<8x256xf32>, i32 -> vector<8x256xf32>
    %156 = vector.extract_strided_slice %0 {offsets = [15, 0], sizes = [1, 256], strides = [1, 1]} : vector<20x256xf32> to vector<1x256xf32>
    %157 = vector.broadcast %156 : vector<1x256xf32> to vector<8x256xf32>
    %158 = arith.mulf %155, %157 : vector<8x256xf32>
    %c6_64 = arith.constant 6 : index
    %c0_65 = arith.constant 0 : index
    %c0_66 = arith.constant 0 : index
    %159 = vector.load %arg4[%c6_64, %c0_65, %c0_66] : memref<9x16x8xbf16, #tpu.memory_space<vmem>>, vector<1x16x8xbf16>
    %160 = vector.shape_cast %159 : vector<1x16x8xbf16> to vector<16x8xbf16>
    %161 = arith.truncf %158 : vector<8x256xf32> to vector<8x256xbf16>
    %cst_67 = arith.constant dense<0.000000e+00> : vector<16x256xf32>
    %162 = tpu.matmul %160, %161, %cst_67 {dimension_numbers = #tpu.dot_dimension_numbers<[1], [0], [0], [1], [0, 0, 1, 1], [], []>} : vector<16x8xbf16>, vector<8x256xbf16>, vector<16x256xf32> -> vector<16x256xf32>
    %163 = arith.addf %154, %162 : vector<16x256xf32>
    %c224_i32 = arith.constant 224 : i32
    %164 = tpu.dynamic_rotate %105 by %c224_i32 dim 1 : vector<8x256xf32>, i32 -> vector<8x256xf32>
    %165 = vector.extract_strided_slice %0 {offsets = [16, 0], sizes = [1, 256], strides = [1, 1]} : vector<20x256xf32> to vector<1x256xf32>
    %166 = vector.broadcast %165 : vector<1x256xf32> to vector<8x256xf32>
    %167 = arith.mulf %164, %166 : vector<8x256xf32>
    %c7_68 = arith.constant 7 : index
    %c0_69 = arith.constant 0 : index
    %c0_70 = arith.constant 0 : index
    %168 = vector.load %arg4[%c7_68, %c0_69, %c0_70] : memref<9x16x8xbf16, #tpu.memory_space<vmem>>, vector<1x16x8xbf16>
    %169 = vector.shape_cast %168 : vector<1x16x8xbf16> to vector<16x8xbf16>
    %170 = arith.truncf %167 : vector<8x256xf32> to vector<8x256xbf16>
    %cst_71 = arith.constant dense<0.000000e+00> : vector<16x256xf32>
    %171 = tpu.matmul %169, %170, %cst_71 {dimension_numbers = #tpu.dot_dimension_numbers<[1], [0], [0], [1], [0, 0, 1, 1], [], []>} : vector<16x8xbf16>, vector<8x256xbf16>, vector<16x256xf32> -> vector<16x256xf32>
    %172 = arith.addf %163, %171 : vector<16x256xf32>
    %c222_i32 = arith.constant 222 : i32
    %173 = tpu.dynamic_rotate %105 by %c222_i32 dim 1 : vector<8x256xf32>, i32 -> vector<8x256xf32>
    %174 = vector.extract_strided_slice %0 {offsets = [17, 0], sizes = [1, 256], strides = [1, 1]} : vector<20x256xf32> to vector<1x256xf32>
    %175 = vector.broadcast %174 : vector<1x256xf32> to vector<8x256xf32>
    %176 = arith.mulf %173, %175 : vector<8x256xf32>
    %c8_72 = arith.constant 8 : index
    %c0_73 = arith.constant 0 : index
    %c0_74 = arith.constant 0 : index
    %177 = vector.load %arg4[%c8_72, %c0_73, %c0_74] : memref<9x16x8xbf16, #tpu.memory_space<vmem>>, vector<1x16x8xbf16>
    %178 = vector.shape_cast %177 : vector<1x16x8xbf16> to vector<16x8xbf16>
    %179 = arith.truncf %176 : vector<8x256xf32> to vector<8x256xbf16>
    %cst_75 = arith.constant dense<0.000000e+00> : vector<16x256xf32>
    %180 = tpu.matmul %178, %179, %cst_75 {dimension_numbers = #tpu.dot_dimension_numbers<[1], [0], [0], [1], [0, 0, 1, 1], [], []>} : vector<16x8xbf16>, vector<8x256xbf16>, vector<16x256xf32> -> vector<16x256xf32>
    %181 = arith.addf %172, %180 : vector<16x256xf32>
    %c0_76 = arith.constant 0 : index
    %c0_77 = arith.constant 0 : index
    %182 = vector.load %arg10[%c0_76, %c0_77] : memref<16x1xf32, #tpu.memory_space<vmem>>, vector<16x1xf32>
    %183 = vector.broadcast %182 : vector<16x1xf32> to vector<16x256xf32>
    %184 = arith.addf %181, %183 : vector<16x256xf32>
    %cst_78 = arith.constant 0.000000e+00 : f32
    %185 = vector.broadcast %cst_78 : f32 to vector<16x256xf32>
    %186 = arith.maximumf %184, %185 : vector<16x256xf32>
    %c17_i32_79 = arith.constant 17 : i32
    %187 = tpu.dynamic_rotate %186 by %c17_i32_79 dim 1 : vector<16x256xf32>, i32 -> vector<16x256xf32>
    %188 = vector.extract_strided_slice %0 {offsets = [0, 0], sizes = [1, 256], strides = [1, 1]} : vector<20x256xf32> to vector<1x256xf32>
    %189 = vector.broadcast %188 : vector<1x256xf32> to vector<16x256xf32>
    %190 = arith.mulf %187, %189 : vector<16x256xf32>
    %c0_80 = arith.constant 0 : index
    %c0_81 = arith.constant 0 : index
    %c0_82 = arith.constant 0 : index
    %191 = vector.load %arg5[%c0_80, %c0_81, %c0_82] : memref<9x8x16xbf16, #tpu.memory_space<vmem>>, vector<1x8x16xbf16>
    %192 = vector.shape_cast %191 : vector<1x8x16xbf16> to vector<8x16xbf16>
    %193 = arith.truncf %190 : vector<16x256xf32> to vector<16x256xbf16>
    %cst_83 = arith.constant dense<0.000000e+00> : vector<8x256xf32>
    %194 = tpu.matmul %192, %193, %cst_83 {dimension_numbers = #tpu.dot_dimension_numbers<[1], [0], [0], [1], [0, 0, 1, 1], [], []>} : vector<8x16xbf16>, vector<16x256xbf16>, vector<8x256xf32> -> vector<8x256xf32>
    %c16_i32_84 = arith.constant 16 : i32
    %195 = tpu.dynamic_rotate %186 by %c16_i32_84 dim 1 : vector<16x256xf32>, i32 -> vector<16x256xf32>
    %196 = vector.extract_strided_slice %0 {offsets = [1, 0], sizes = [1, 256], strides = [1, 1]} : vector<20x256xf32> to vector<1x256xf32>
    %197 = vector.broadcast %196 : vector<1x256xf32> to vector<16x256xf32>
    %198 = arith.mulf %195, %197 : vector<16x256xf32>
    %c1_85 = arith.constant 1 : index
    %c0_86 = arith.constant 0 : index
    %c0_87 = arith.constant 0 : index
    %199 = vector.load %arg5[%c1_85, %c0_86, %c0_87] : memref<9x8x16xbf16, #tpu.memory_space<vmem>>, vector<1x8x16xbf16>
    %200 = vector.shape_cast %199 : vector<1x8x16xbf16> to vector<8x16xbf16>
    %201 = arith.truncf %198 : vector<16x256xf32> to vector<16x256xbf16>
    %cst_88 = arith.constant dense<0.000000e+00> : vector<8x256xf32>
    %202 = tpu.matmul %200, %201, %cst_88 {dimension_numbers = #tpu.dot_dimension_numbers<[1], [0], [0], [1], [0, 0, 1, 1], [], []>} : vector<8x16xbf16>, vector<16x256xbf16>, vector<8x256xf32> -> vector<8x256xf32>
    %203 = arith.addf %194, %202 : vector<8x256xf32>
    %c15_i32_89 = arith.constant 15 : i32
    %204 = tpu.dynamic_rotate %186 by %c15_i32_89 dim 1 : vector<16x256xf32>, i32 -> vector<16x256xf32>
    %205 = vector.extract_strided_slice %0 {offsets = [2, 0], sizes = [1, 256], strides = [1, 1]} : vector<20x256xf32> to vector<1x256xf32>
    %206 = vector.broadcast %205 : vector<1x256xf32> to vector<16x256xf32>
    %207 = arith.mulf %204, %206 : vector<16x256xf32>
    %c2_90 = arith.constant 2 : index
    %c0_91 = arith.constant 0 : index
    %c0_92 = arith.constant 0 : index
    %208 = vector.load %arg5[%c2_90, %c0_91, %c0_92] : memref<9x8x16xbf16, #tpu.memory_space<vmem>>, vector<1x8x16xbf16>
    %209 = vector.shape_cast %208 : vector<1x8x16xbf16> to vector<8x16xbf16>
    %210 = arith.truncf %207 : vector<16x256xf32> to vector<16x256xbf16>
    %cst_93 = arith.constant dense<0.000000e+00> : vector<8x256xf32>
    %211 = tpu.matmul %209, %210, %cst_93 {dimension_numbers = #tpu.dot_dimension_numbers<[1], [0], [0], [1], [0, 0, 1, 1], [], []>} : vector<8x16xbf16>, vector<16x256xbf16>, vector<8x256xf32> -> vector<8x256xf32>
    %212 = arith.addf %203, %211 : vector<8x256xf32>
    %c1_i32_94 = arith.constant 1 : i32
    %213 = tpu.dynamic_rotate %186 by %c1_i32_94 dim 1 : vector<16x256xf32>, i32 -> vector<16x256xf32>
    %214 = vector.extract_strided_slice %0 {offsets = [3, 0], sizes = [1, 256], strides = [1, 1]} : vector<20x256xf32> to vector<1x256xf32>
    %215 = vector.broadcast %214 : vector<1x256xf32> to vector<16x256xf32>
    %216 = arith.mulf %213, %215 : vector<16x256xf32>
    %c3_95 = arith.constant 3 : index
    %c0_96 = arith.constant 0 : index
    %c0_97 = arith.constant 0 : index
    %217 = vector.load %arg5[%c3_95, %c0_96, %c0_97] : memref<9x8x16xbf16, #tpu.memory_space<vmem>>, vector<1x8x16xbf16>
    %218 = vector.shape_cast %217 : vector<1x8x16xbf16> to vector<8x16xbf16>
    %219 = arith.truncf %216 : vector<16x256xf32> to vector<16x256xbf16>
    %cst_98 = arith.constant dense<0.000000e+00> : vector<8x256xf32>
    %220 = tpu.matmul %218, %219, %cst_98 {dimension_numbers = #tpu.dot_dimension_numbers<[1], [0], [0], [1], [0, 0, 1, 1], [], []>} : vector<8x16xbf16>, vector<16x256xbf16>, vector<8x256xf32> -> vector<8x256xf32>
    %221 = arith.addf %212, %220 : vector<8x256xf32>
    %c4_99 = arith.constant 4 : index
    %c0_100 = arith.constant 0 : index
    %c0_101 = arith.constant 0 : index
    %222 = vector.load %arg5[%c4_99, %c0_100, %c0_101] : memref<9x8x16xbf16, #tpu.memory_space<vmem>>, vector<1x8x16xbf16>
    %223 = vector.shape_cast %222 : vector<1x8x16xbf16> to vector<8x16xbf16>
    %224 = arith.truncf %186 : vector<16x256xf32> to vector<16x256xbf16>
    %cst_102 = arith.constant dense<0.000000e+00> : vector<8x256xf32>
    %225 = tpu.matmul %223, %224, %cst_102 {dimension_numbers = #tpu.dot_dimension_numbers<[1], [0], [0], [1], [0, 0, 1, 1], [], []>} : vector<8x16xbf16>, vector<16x256xbf16>, vector<8x256xf32> -> vector<8x256xf32>
    %226 = arith.addf %221, %225 : vector<8x256xf32>
    %c255_i32_103 = arith.constant 255 : i32
    %227 = tpu.dynamic_rotate %186 by %c255_i32_103 dim 1 : vector<16x256xf32>, i32 -> vector<16x256xf32>
    %228 = vector.extract_strided_slice %0 {offsets = [5, 0], sizes = [1, 256], strides = [1, 1]} : vector<20x256xf32> to vector<1x256xf32>
    %229 = vector.broadcast %228 : vector<1x256xf32> to vector<16x256xf32>
    %230 = arith.mulf %227, %229 : vector<16x256xf32>
    %c5_104 = arith.constant 5 : index
    %c0_105 = arith.constant 0 : index
    %c0_106 = arith.constant 0 : index
    %231 = vector.load %arg5[%c5_104, %c0_105, %c0_106] : memref<9x8x16xbf16, #tpu.memory_space<vmem>>, vector<1x8x16xbf16>
    %232 = vector.shape_cast %231 : vector<1x8x16xbf16> to vector<8x16xbf16>
    %233 = arith.truncf %230 : vector<16x256xf32> to vector<16x256xbf16>
    %cst_107 = arith.constant dense<0.000000e+00> : vector<8x256xf32>
    %234 = tpu.matmul %232, %233, %cst_107 {dimension_numbers = #tpu.dot_dimension_numbers<[1], [0], [0], [1], [0, 0, 1, 1], [], []>} : vector<8x16xbf16>, vector<16x256xbf16>, vector<8x256xf32> -> vector<8x256xf32>
    %235 = arith.addf %226, %234 : vector<8x256xf32>
    %c241_i32_108 = arith.constant 241 : i32
    %236 = tpu.dynamic_rotate %186 by %c241_i32_108 dim 1 : vector<16x256xf32>, i32 -> vector<16x256xf32>
    %237 = vector.extract_strided_slice %0 {offsets = [6, 0], sizes = [1, 256], strides = [1, 1]} : vector<20x256xf32> to vector<1x256xf32>
    %238 = vector.broadcast %237 : vector<1x256xf32> to vector<16x256xf32>
    %239 = arith.mulf %236, %238 : vector<16x256xf32>
    %c6_109 = arith.constant 6 : index
    %c0_110 = arith.constant 0 : index
    %c0_111 = arith.constant 0 : index
    %240 = vector.load %arg5[%c6_109, %c0_110, %c0_111] : memref<9x8x16xbf16, #tpu.memory_space<vmem>>, vector<1x8x16xbf16>
    %241 = vector.shape_cast %240 : vector<1x8x16xbf16> to vector<8x16xbf16>
    %242 = arith.truncf %239 : vector<16x256xf32> to vector<16x256xbf16>
    %cst_112 = arith.constant dense<0.000000e+00> : vector<8x256xf32>
    %243 = tpu.matmul %241, %242, %cst_112 {dimension_numbers = #tpu.dot_dimension_numbers<[1], [0], [0], [1], [0, 0, 1, 1], [], []>} : vector<8x16xbf16>, vector<16x256xbf16>, vector<8x256xf32> -> vector<8x256xf32>
    %244 = arith.addf %235, %243 : vector<8x256xf32>
    %c240_i32_113 = arith.constant 240 : i32
    %245 = tpu.dynamic_rotate %186 by %c240_i32_113 dim 1 : vector<16x256xf32>, i32 -> vector<16x256xf32>
    %246 = vector.extract_strided_slice %0 {offsets = [7, 0], sizes = [1, 256], strides = [1, 1]} : vector<20x256xf32> to vector<1x256xf32>
    %247 = vector.broadcast %246 : vector<1x256xf32> to vector<16x256xf32>
    %248 = arith.mulf %245, %247 : vector<16x256xf32>
    %c7_114 = arith.constant 7 : index
    %c0_115 = arith.constant 0 : index
    %c0_116 = arith.constant 0 : index
    %249 = vector.load %arg5[%c7_114, %c0_115, %c0_116] : memref<9x8x16xbf16, #tpu.memory_space<vmem>>, vector<1x8x16xbf16>
    %250 = vector.shape_cast %249 : vector<1x8x16xbf16> to vector<8x16xbf16>
    %251 = arith.truncf %248 : vector<16x256xf32> to vector<16x256xbf16>
    %cst_117 = arith.constant dense<0.000000e+00> : vector<8x256xf32>
    %252 = tpu.matmul %250, %251, %cst_117 {dimension_numbers = #tpu.dot_dimension_numbers<[1], [0], [0], [1], [0, 0, 1, 1], [], []>} : vector<8x16xbf16>, vector<16x256xbf16>, vector<8x256xf32> -> vector<8x256xf32>
    %253 = arith.addf %244, %252 : vector<8x256xf32>
    %c239_i32_118 = arith.constant 239 : i32
    %254 = tpu.dynamic_rotate %186 by %c239_i32_118 dim 1 : vector<16x256xf32>, i32 -> vector<16x256xf32>
    %255 = vector.extract_strided_slice %0 {offsets = [8, 0], sizes = [1, 256], strides = [1, 1]} : vector<20x256xf32> to vector<1x256xf32>
    %256 = vector.broadcast %255 : vector<1x256xf32> to vector<16x256xf32>
    %257 = arith.mulf %254, %256 : vector<16x256xf32>
    %c8_119 = arith.constant 8 : index
    %c0_120 = arith.constant 0 : index
    %c0_121 = arith.constant 0 : index
    %258 = vector.load %arg5[%c8_119, %c0_120, %c0_121] : memref<9x8x16xbf16, #tpu.memory_space<vmem>>, vector<1x8x16xbf16>
    %259 = vector.shape_cast %258 : vector<1x8x16xbf16> to vector<8x16xbf16>
    %260 = arith.truncf %257 : vector<16x256xf32> to vector<16x256xbf16>
    %cst_122 = arith.constant dense<0.000000e+00> : vector<8x256xf32>
    %261 = tpu.matmul %259, %260, %cst_122 {dimension_numbers = #tpu.dot_dimension_numbers<[1], [0], [0], [1], [0, 0, 1, 1], [], []>} : vector<8x16xbf16>, vector<16x256xbf16>, vector<8x256xf32> -> vector<8x256xf32>
    %262 = arith.addf %253, %261 : vector<8x256xf32>
    %c17_i32_123 = arith.constant 17 : i32
    %263 = tpu.dynamic_rotate %83 by %c17_i32_123 dim 1 : vector<8x256xf32>, i32 -> vector<8x256xf32>
    %264 = vector.extract_strided_slice %0 {offsets = [0, 0], sizes = [1, 256], strides = [1, 1]} : vector<20x256xf32> to vector<1x256xf32>
    %265 = vector.broadcast %264 : vector<1x256xf32> to vector<8x256xf32>
    %266 = arith.mulf %263, %265 : vector<8x256xf32>
    %c0_124 = arith.constant 0 : index
    %c0_125 = arith.constant 0 : index
    %c0_126 = arith.constant 0 : index
    %267 = vector.load %arg6[%c0_124, %c0_125, %c0_126] : memref<9x8x8xbf16, #tpu.memory_space<vmem>>, vector<1x8x8xbf16>
    %268 = vector.shape_cast %267 : vector<1x8x8xbf16> to vector<8x8xbf16>
    %269 = arith.truncf %266 : vector<8x256xf32> to vector<8x256xbf16>
    %cst_127 = arith.constant dense<0.000000e+00> : vector<8x256xf32>
    %270 = tpu.matmul %268, %269, %cst_127 {dimension_numbers = #tpu.dot_dimension_numbers<[1], [0], [0], [1], [0, 0, 1, 1], [], []>} : vector<8x8xbf16>, vector<8x256xbf16>, vector<8x256xf32> -> vector<8x256xf32>
    %c16_i32_128 = arith.constant 16 : i32
    %271 = tpu.dynamic_rotate %83 by %c16_i32_128 dim 1 : vector<8x256xf32>, i32 -> vector<8x256xf32>
    %272 = vector.extract_strided_slice %0 {offsets = [1, 0], sizes = [1, 256], strides = [1, 1]} : vector<20x256xf32> to vector<1x256xf32>
    %273 = vector.broadcast %272 : vector<1x256xf32> to vector<8x256xf32>
    %274 = arith.mulf %271, %273 : vector<8x256xf32>
    %c1_129 = arith.constant 1 : index
    %c0_130 = arith.constant 0 : index
    %c0_131 = arith.constant 0 : index
    %275 = vector.load %arg6[%c1_129, %c0_130, %c0_131] : memref<9x8x8xbf16, #tpu.memory_space<vmem>>, vector<1x8x8xbf16>
    %276 = vector.shape_cast %275 : vector<1x8x8xbf16> to vector<8x8xbf16>
    %277 = arith.truncf %274 : vector<8x256xf32> to vector<8x256xbf16>
    %cst_132 = arith.constant dense<0.000000e+00> : vector<8x256xf32>
    %278 = tpu.matmul %276, %277, %cst_132 {dimension_numbers = #tpu.dot_dimension_numbers<[1], [0], [0], [1], [0, 0, 1, 1], [], []>} : vector<8x8xbf16>, vector<8x256xbf16>, vector<8x256xf32> -> vector<8x256xf32>
    %279 = arith.addf %270, %278 : vector<8x256xf32>
    %c15_i32_133 = arith.constant 15 : i32
    %280 = tpu.dynamic_rotate %83 by %c15_i32_133 dim 1 : vector<8x256xf32>, i32 -> vector<8x256xf32>
    %281 = vector.extract_strided_slice %0 {offsets = [2, 0], sizes = [1, 256], strides = [1, 1]} : vector<20x256xf32> to vector<1x256xf32>
    %282 = vector.broadcast %281 : vector<1x256xf32> to vector<8x256xf32>
    %283 = arith.mulf %280, %282 : vector<8x256xf32>
    %c2_134 = arith.constant 2 : index
    %c0_135 = arith.constant 0 : index
    %c0_136 = arith.constant 0 : index
    %284 = vector.load %arg6[%c2_134, %c0_135, %c0_136] : memref<9x8x8xbf16, #tpu.memory_space<vmem>>, vector<1x8x8xbf16>
    %285 = vector.shape_cast %284 : vector<1x8x8xbf16> to vector<8x8xbf16>
    %286 = arith.truncf %283 : vector<8x256xf32> to vector<8x256xbf16>
    %cst_137 = arith.constant dense<0.000000e+00> : vector<8x256xf32>
    %287 = tpu.matmul %285, %286, %cst_137 {dimension_numbers = #tpu.dot_dimension_numbers<[1], [0], [0], [1], [0, 0, 1, 1], [], []>} : vector<8x8xbf16>, vector<8x256xbf16>, vector<8x256xf32> -> vector<8x256xf32>
    %288 = arith.addf %279, %287 : vector<8x256xf32>
    %c1_i32_138 = arith.constant 1 : i32
    %289 = tpu.dynamic_rotate %83 by %c1_i32_138 dim 1 : vector<8x256xf32>, i32 -> vector<8x256xf32>
    %290 = vector.extract_strided_slice %0 {offsets = [3, 0], sizes = [1, 256], strides = [1, 1]} : vector<20x256xf32> to vector<1x256xf32>
    %291 = vector.broadcast %290 : vector<1x256xf32> to vector<8x256xf32>
    %292 = arith.mulf %289, %291 : vector<8x256xf32>
    %c3_139 = arith.constant 3 : index
    %c0_140 = arith.constant 0 : index
    %c0_141 = arith.constant 0 : index
    %293 = vector.load %arg6[%c3_139, %c0_140, %c0_141] : memref<9x8x8xbf16, #tpu.memory_space<vmem>>, vector<1x8x8xbf16>
    %294 = vector.shape_cast %293 : vector<1x8x8xbf16> to vector<8x8xbf16>
    %295 = arith.truncf %292 : vector<8x256xf32> to vector<8x256xbf16>
    %cst_142 = arith.constant dense<0.000000e+00> : vector<8x256xf32>
    %296 = tpu.matmul %294, %295, %cst_142 {dimension_numbers = #tpu.dot_dimension_numbers<[1], [0], [0], [1], [0, 0, 1, 1], [], []>} : vector<8x8xbf16>, vector<8x256xbf16>, vector<8x256xf32> -> vector<8x256xf32>
    %297 = arith.addf %288, %296 : vector<8x256xf32>
    %c4_143 = arith.constant 4 : index
    %c0_144 = arith.constant 0 : index
    %c0_145 = arith.constant 0 : index
    %298 = vector.load %arg6[%c4_143, %c0_144, %c0_145] : memref<9x8x8xbf16, #tpu.memory_space<vmem>>, vector<1x8x8xbf16>
    %299 = vector.shape_cast %298 : vector<1x8x8xbf16> to vector<8x8xbf16>
    %300 = arith.truncf %83 : vector<8x256xf32> to vector<8x256xbf16>
    %cst_146 = arith.constant dense<0.000000e+00> : vector<8x256xf32>
    %301 = tpu.matmul %299, %300, %cst_146 {dimension_numbers = #tpu.dot_dimension_numbers<[1], [0], [0], [1], [0, 0, 1, 1], [], []>} : vector<8x8xbf16>, vector<8x256xbf16>, vector<8x256xf32> -> vector<8x256xf32>
    %302 = arith.addf %297, %301 : vector<8x256xf32>
    %c255_i32_147 = arith.constant 255 : i32
    %303 = tpu.dynamic_rotate %83 by %c255_i32_147 dim 1 : vector<8x256xf32>, i32 -> vector<8x256xf32>
    %304 = vector.extract_strided_slice %0 {offsets = [5, 0], sizes = [1, 256], strides = [1, 1]} : vector<20x256xf32> to vector<1x256xf32>
    %305 = vector.broadcast %304 : vector<1x256xf32> to vector<8x256xf32>
    %306 = arith.mulf %303, %305 : vector<8x256xf32>
    %c5_148 = arith.constant 5 : index
    %c0_149 = arith.constant 0 : index
    %c0_150 = arith.constant 0 : index
    %307 = vector.load %arg6[%c5_148, %c0_149, %c0_150] : memref<9x8x8xbf16, #tpu.memory_space<vmem>>, vector<1x8x8xbf16>
    %308 = vector.shape_cast %307 : vector<1x8x8xbf16> to vector<8x8xbf16>
    %309 = arith.truncf %306 : vector<8x256xf32> to vector<8x256xbf16>
    %cst_151 = arith.constant dense<0.000000e+00> : vector<8x256xf32>
    %310 = tpu.matmul %308, %309, %cst_151 {dimension_numbers = #tpu.dot_dimension_numbers<[1], [0], [0], [1], [0, 0, 1, 1], [], []>} : vector<8x8xbf16>, vector<8x256xbf16>, vector<8x256xf32> -> vector<8x256xf32>
    %311 = arith.addf %302, %310 : vector<8x256xf32>
    %c241_i32_152 = arith.constant 241 : i32
    %312 = tpu.dynamic_rotate %83 by %c241_i32_152 dim 1 : vector<8x256xf32>, i32 -> vector<8x256xf32>
    %313 = vector.extract_strided_slice %0 {offsets = [6, 0], sizes = [1, 256], strides = [1, 1]} : vector<20x256xf32> to vector<1x256xf32>
    %314 = vector.broadcast %313 : vector<1x256xf32> to vector<8x256xf32>
    %315 = arith.mulf %312, %314 : vector<8x256xf32>
    %c6_153 = arith.constant 6 : index
    %c0_154 = arith.constant 0 : index
    %c0_155 = arith.constant 0 : index
    %316 = vector.load %arg6[%c6_153, %c0_154, %c0_155] : memref<9x8x8xbf16, #tpu.memory_space<vmem>>, vector<1x8x8xbf16>
    %317 = vector.shape_cast %316 : vector<1x8x8xbf16> to vector<8x8xbf16>
    %318 = arith.truncf %315 : vector<8x256xf32> to vector<8x256xbf16>
    %cst_156 = arith.constant dense<0.000000e+00> : vector<8x256xf32>
    %319 = tpu.matmul %317, %318, %cst_156 {dimension_numbers = #tpu.dot_dimension_numbers<[1], [0], [0], [1], [0, 0, 1, 1], [], []>} : vector<8x8xbf16>, vector<8x256xbf16>, vector<8x256xf32> -> vector<8x256xf32>
    %320 = arith.addf %311, %319 : vector<8x256xf32>
    %c240_i32_157 = arith.constant 240 : i32
    %321 = tpu.dynamic_rotate %83 by %c240_i32_157 dim 1 : vector<8x256xf32>, i32 -> vector<8x256xf32>
    %322 = vector.extract_strided_slice %0 {offsets = [7, 0], sizes = [1, 256], strides = [1, 1]} : vector<20x256xf32> to vector<1x256xf32>
    %323 = vector.broadcast %322 : vector<1x256xf32> to vector<8x256xf32>
    %324 = arith.mulf %321, %323 : vector<8x256xf32>
    %c7_158 = arith.constant 7 : index
    %c0_159 = arith.constant 0 : index
    %c0_160 = arith.constant 0 : index
    %325 = vector.load %arg6[%c7_158, %c0_159, %c0_160] : memref<9x8x8xbf16, #tpu.memory_space<vmem>>, vector<1x8x8xbf16>
    %326 = vector.shape_cast %325 : vector<1x8x8xbf16> to vector<8x8xbf16>
    %327 = arith.truncf %324 : vector<8x256xf32> to vector<8x256xbf16>
    %cst_161 = arith.constant dense<0.000000e+00> : vector<8x256xf32>
    %328 = tpu.matmul %326, %327, %cst_161 {dimension_numbers = #tpu.dot_dimension_numbers<[1], [0], [0], [1], [0, 0, 1, 1], [], []>} : vector<8x8xbf16>, vector<8x256xbf16>, vector<8x256xf32> -> vector<8x256xf32>
    %329 = arith.addf %320, %328 : vector<8x256xf32>
    %c239_i32_162 = arith.constant 239 : i32
    %330 = tpu.dynamic_rotate %83 by %c239_i32_162 dim 1 : vector<8x256xf32>, i32 -> vector<8x256xf32>
    %331 = vector.extract_strided_slice %0 {offsets = [8, 0], sizes = [1, 256], strides = [1, 1]} : vector<20x256xf32> to vector<1x256xf32>
    %332 = vector.broadcast %331 : vector<1x256xf32> to vector<8x256xf32>
    %333 = arith.mulf %330, %332 : vector<8x256xf32>
    %c8_163 = arith.constant 8 : index
    %c0_164 = arith.constant 0 : index
    %c0_165 = arith.constant 0 : index
    %334 = vector.load %arg6[%c8_163, %c0_164, %c0_165] : memref<9x8x8xbf16, #tpu.memory_space<vmem>>, vector<1x8x8xbf16>
    %335 = vector.shape_cast %334 : vector<1x8x8xbf16> to vector<8x8xbf16>
    %336 = arith.truncf %333 : vector<8x256xf32> to vector<8x256xbf16>
    %cst_166 = arith.constant dense<0.000000e+00> : vector<8x256xf32>
    %337 = tpu.matmul %335, %336, %cst_166 {dimension_numbers = #tpu.dot_dimension_numbers<[1], [0], [0], [1], [0, 0, 1, 1], [], []>} : vector<8x8xbf16>, vector<8x256xbf16>, vector<8x256xf32> -> vector<8x256xf32>
    %338 = arith.addf %329, %337 : vector<8x256xf32>
    %339 = arith.addf %262, %338 : vector<8x256xf32>
    %c0_167 = arith.constant 0 : index
    %c0_168 = arith.constant 0 : index
    %340 = vector.load %arg11[%c0_167, %c0_168] : memref<8x1xf32, #tpu.memory_space<vmem>>, vector<8x1xf32>
    %341 = vector.broadcast %340 : vector<8x1xf32> to vector<8x256xf32>
    %342 = arith.addf %339, %341 : vector<8x256xf32>
    %cst_169 = arith.constant 0.000000e+00 : f32
    %343 = vector.broadcast %cst_169 : f32 to vector<8x256xf32>
    %344 = arith.maximumf %342, %343 : vector<8x256xf32>
    %c0_170 = arith.constant 0 : index
    %c0_171 = arith.constant 0 : index
    %345 = vector.load %arg7[%c0_170, %c0_171] : memref<4x8xbf16, #tpu.memory_space<vmem>>, vector<4x8xbf16>
    %346 = arith.truncf %344 : vector<8x256xf32> to vector<8x256xbf16>
    %cst_172 = arith.constant dense<0.000000e+00> : vector<4x256xf32>
    %347 = tpu.matmul %345, %346, %cst_172 {dimension_numbers = #tpu.dot_dimension_numbers<[1], [0], [0], [1], [0, 0, 1, 1], [], []>} : vector<4x8xbf16>, vector<8x256xbf16>, vector<4x256xf32> -> vector<4x256xf32>
    %c0_173 = arith.constant 0 : index
    %c0_174 = arith.constant 0 : index
    %348 = vector.load %arg12[%c0_173, %c0_174] : memref<4x1xf32, #tpu.memory_space<vmem>>, vector<4x1xf32>
    %349 = vector.broadcast %348 : vector<4x1xf32> to vector<4x256xf32>
    %350 = arith.addf %347, %349 : vector<4x256xf32>
    %c0_175 = arith.constant 0 : index
    %c0_176 = arith.constant 0 : index
    %c0_177 = arith.constant 0 : index
    %351 = vector.load %arg15[%c0_175, %c0_176, %c0_177] : memref<1x4x256xf32, #tpu.memory_space<vmem>>, vector<1x4x256xf32>
    %352 = vector.shape_cast %351 : vector<1x4x256xf32> to vector<4x256xf32>
    %353 = vector.shape_cast %350 : vector<4x256xf32> to vector<1x4x256xf32>
    tpu.vector_store %arg15[%c0_175, %c0_176, %c0_177], %353 {strides = array<i32>} : memref<1x4x256xf32, #tpu.memory_space<vmem>>, vector<1x4x256xf32>,
    %c0_178 = arith.constant 0 : index
    %c0_179 = arith.constant 0 : index
    %354 = vector.load %arg8[%c0_178, %c0_179] : memref<4x16xf32, #tpu.memory_space<vmem>>, vector<4x16xf32>
    %cst_180 = arith.constant dense<0.000000e+00> : vector<4x256xf32>
    %355 = tpu.matmul %354, %186, %cst_180 {dimension_numbers = #tpu.dot_dimension_numbers<[1], [0], [0], [1], [0, 0, 1, 1], [], []>} : vector<4x16xf32>, vector<16x256xf32>, vector<4x256xf32> -> vector<4x256xf32>
    %cst_181 = arith.constant dense<0.000000e+00> : vector<4xf32>
    %356 = vector.multi_reduction <add>, %355, %cst_181 [1] : vector<4x256xf32> to vector<4xf32>
    %357 = vector.shape_cast %356 : vector<4xf32> to vector<4x1xf32>
    %c0_182 = arith.constant 0 : index
    %c0_183 = arith.constant 0 : index
    %358 = vector.load %arg13[%c0_182, %c0_183] : memref<4x1xf32, #tpu.memory_space<vmem>>, vector<4x1xf32>
    %359 = arith.addf %357, %358 : vector<4x1xf32>
    %c0_184 = arith.constant 0 : index
    %c0_185 = arith.constant 0 : index
    %c0_186 = arith.constant 0 : index
    %360 = vector.load %arg14[%c0_184, %c0_185, %c0_186] : memref<1x4x1xf32, #tpu.memory_space<vmem>>, vector<1x4x1xf32>
    %361 = vector.shape_cast %360 : vector<1x4x1xf32> to vector<4x1xf32>
    %362 = vector.shape_cast %359 : vector<4x1xf32> to vector<1x4x1xf32>
    tpu.vector_store %arg14[%c0_184, %c0_185, %c0_186], %362 {strides = array<i32>} : memref<1x4x1xf32, #tpu.memory_space<vmem>>, vector<1x4x1xf32>,
    return
  }
  func.func @transform_0(%arg0: i32) -> (i32, i32, i32) {
    %c0_i32 = arith.constant 0 : i32
    %c0_i32_0 = arith.constant 0 : i32
    %c0_i32_1 = arith.constant 0 : i32
    return %arg0, %c0_i32, %c0_i32_0 : i32, i32, i32
  }
  func.func @transform_1(%arg0: i32) -> (i32, i32) {
    %c0_i32 = arith.constant 0 : i32
    %c0_i32_0 = arith.constant 0 : i32
    %c0_i32_1 = arith.constant 0 : i32
    return %c0_i32, %c0_i32_0 : i32, i32
  }
  func.func @transform_2(%arg0: i32) -> (i32, i32, i32) {
    %c0_i32 = arith.constant 0 : i32
    %c0_i32_0 = arith.constant 0 : i32
    %c0_i32_1 = arith.constant 0 : i32
    %c0_i32_2 = arith.constant 0 : i32
    return %c0_i32, %c0_i32_0, %c0_i32_1 : i32, i32, i32
  }
  func.func @transform_3(%arg0: i32) -> (i32, i32, i32) {
    %c0_i32 = arith.constant 0 : i32
    %c0_i32_0 = arith.constant 0 : i32
    %c0_i32_1 = arith.constant 0 : i32
    %c0_i32_2 = arith.constant 0 : i32
    return %c0_i32, %c0_i32_0, %c0_i32_1 : i32, i32, i32
  }
  func.func @transform_4(%arg0: i32) -> (i32, i32, i32) {
    %c0_i32 = arith.constant 0 : i32
    %c0_i32_0 = arith.constant 0 : i32
    %c0_i32_1 = arith.constant 0 : i32
    %c0_i32_2 = arith.constant 0 : i32
    return %c0_i32, %c0_i32_0, %c0_i32_1 : i32, i32, i32
  }
  func.func @transform_5(%arg0: i32) -> (i32, i32, i32) {
    %c0_i32 = arith.constant 0 : i32
    %c0_i32_0 = arith.constant 0 : i32
    %c0_i32_1 = arith.constant 0 : i32
    %c0_i32_2 = arith.constant 0 : i32
    return %c0_i32, %c0_i32_0, %c0_i32_1 : i32, i32, i32
  }
  func.func @transform_6(%arg0: i32) -> (i32, i32) {
    %c0_i32 = arith.constant 0 : i32
    %c0_i32_0 = arith.constant 0 : i32
    %c0_i32_1 = arith.constant 0 : i32
    return %c0_i32, %c0_i32_0 : i32, i32
  }
  func.func @transform_7(%arg0: i32) -> (i32, i32) {
    %c0_i32 = arith.constant 0 : i32
    %c0_i32_0 = arith.constant 0 : i32
    %c0_i32_1 = arith.constant 0 : i32
    return %c0_i32, %c0_i32_0 : i32, i32
  }
  func.func @transform_8(%arg0: i32) -> (i32, i32) {
    %c0_i32 = arith.constant 0 : i32
    %c0_i32_0 = arith.constant 0 : i32
    %c0_i32_1 = arith.constant 0 : i32
    return %c0_i32, %c0_i32_0 : i32, i32
  }
  func.func @transform_9(%arg0: i32) -> (i32, i32) {
    %c0_i32 = arith.constant 0 : i32
    %c0_i32_0 = arith.constant 0 : i32
    %c0_i32_1 = arith.constant 0 : i32
    return %c0_i32, %c0_i32_0 : i32, i32
  }
  func.func @transform_10(%arg0: i32) -> (i32, i32) {
    %c0_i32 = arith.constant 0 : i32
    %c0_i32_0 = arith.constant 0 : i32
    %c0_i32_1 = arith.constant 0 : i32
    return %c0_i32, %c0_i32_0 : i32, i32
  }
  func.func @transform_11(%arg0: i32) -> (i32, i32) {
    %c0_i32 = arith.constant 0 : i32
    %c0_i32_0 = arith.constant 0 : i32
    %c0_i32_1 = arith.constant 0 : i32
    return %c0_i32, %c0_i32_0 : i32, i32
  }
  func.func @transform_12(%arg0: i32) -> (i32, i32) {
    %c0_i32 = arith.constant 0 : i32
    %c0_i32_0 = arith.constant 0 : i32
    %c0_i32_1 = arith.constant 0 : i32
    return %c0_i32, %c0_i32_0 : i32, i32
  }
  func.func @transform_13(%arg0: i32) -> (i32, i32, i32) {
    %c0_i32 = arith.constant 0 : i32
    %c0_i32_0 = arith.constant 0 : i32
    %c0_i32_1 = arith.constant 0 : i32
    return %arg0, %c0_i32, %c0_i32_0 : i32, i32, i32
  }
  func.func @transform_14(%arg0: i32) -> (i32, i32, i32) {
    %c0_i32 = arith.constant 0 : i32
    %c0_i32_0 = arith.constant 0 : i32
    %c0_i32_1 = arith.constant 0 : i32
    return %arg0, %c0_i32, %c0_i32_0 : i32, i32, i32
  }
}

</mosaic_0001>

<bundles_post_ra>
// kernel: unet_forward.1
= control target key start
LH: loop header
LB: loop body
LE: loop exit
PB: predicated region body
PF: predicated region fallthrough
CT: control target
= control target key end

     0   :  { %s2921_s29 = smov 0   ;;  %s3753_s0 = inlined_call_operand.vmem [shape: f32[2,8,256], index: 0, kind: input, shape index: {}]   ;;  %s3754_s1 = inlined_call_operand.vmem [shape: f32[20,256], index: 1, kind: input, shape index: {}]   ;;  %s3755_s2 = inlined_call_operand.vmem [shape: bf16[9,8,8], index: 2, kind: input, shape index: {}]   ;;  %s3756_s3 = inlined_call_operand.vmem [shape: bf16[9,16,8], index: 3, kind: input, shape index: {}]   ;;  %s3757_s4 = inlined_call_operand.vmem [shape: bf16[9,8,16], index: 4, kind: input, shape index: {}]   ;;  %s3758_s5 = inlined_call_operand.vmem [shape: bf16[9,8,8], index: 5, kind: input, shape index: {}]   ;;  %s3759_s6 = inlined_call_operand.vmem [shape: bf16[4,8], index: 6, kind: input, shape index: {}]   ;;  %s3760_s7 = inlined_call_operand.vmem [shape: f32[4,16], index: 7, kind: input, shape index: {}]   ;;  %s3761_s8 = inlined_call_operand.vmem [shape: f32[8,1], index: 8, kind: input, shape index: {}]   ;;  %s3762_s9 = inlined_call_operand.vmem [shape: f32[16,1], index: 9, kind: input, shape index: {}]   ;;  %s3763_s10 = inlined_call_operand.vmem [shape: f32[8,1], index: 10, kind: input, shape index: {}]   ;;  %s3764_s11 = inlined_call_operand.vmem [shape: f32[4,1], index: 11, kind: input, shape index: {}]   ;;  %s3765_s12 = inlined_call_operand.vmem [shape: f32[4,1], index: 12, kind: input, shape index: {}]   ;;  %s3766_s13 = inlined_call_operand.vmem [shape: f32[2,4,1], index: 13, kind: output, shape index: {0}]   ;;  %s3767_s14 = inlined_call_operand.vmem [shape: f32[2,4,256], index: 14, kind: output, shape index: {1}]  }
   0x1 LB: > { %s2618_s30 = sadd.s32 4294967295, %s2827_s29   ;;  %p2622_p0 = scmp.ge.s32.totalorder %s2827_s29, 1  ;;  %s2827_s29 = sphi %s2921_s29, %s25_s29  }
   0x2   : > { %p415_p1 = scmp.lt.s32.totalorder %s2827_s29, 3 }
   0x4   : > { %p416_p2 = pnand %p2622_p0, %p415_p1 }
   0x6   : > { %419 = sbr.rel (%p416_p2) target bundleno = 1477 (0x5c5), region = 72 }
   0xb   : > { %p465_p3 = scmp.lt.s32.totalorder %s2618_s30, 1  ;;  %s2829_s19 = smov 17   ;;  %v492_v3 = vlaneseq  ;;  %v2977_v6 = vld [vmem:[%s3754_s1] sm:$0xff]  ;;  %v2982_v7 = vld [vmem:[%s3754_s1 + $0x8] sm:$0xff]  ;;  %vm523_vm3 = vcmask 1043456   ;;  %vm519_vm5 = vcmask 64512  }
   0xc   : > { %s2830_s20 = smov 16   ;;  %s2831_s21 = smov 15   ;;  %v2985_v10 = vperm.slane %v2977_v6, 2  ;;  %v2988_v11 = vperm.slane %v2982_v7, 2  ;;  %v2999_v16 = vperm.slane %v2977_v6, 1  ;;  %v3002_v17 = vperm.slane %v2982_v7, 1 }
   0xd   : > { %s3772_s30 = smov (!%p465_p3, %s2618_s30), 1  ;;  %s2832_s22 = smov 1   ;;  %v2971_v4 = vand.u32 127, %v492_v3  ;;  %v3005_v18 = vperm.slane %v2977_v6, 0  ;;  %v3008_v19 = vperm.slane %v2982_v7, 0  ;;  %v3024_v32 = vperm.slane %v2977_v6, 3 }
   0xe   : > { %s2782_s15 = sshll.u32 %s3772_s30, 4  ;;  %s2833_s23 = smov 127   ;;  %v3027_v33 = vperm.slane %v2982_v7, 3  ;;  %v2628_v47 = vld [vmem:[%s3755_s2 + $0x4] sm:$0xf]  ;;  %v3059_v59 = vperm.slane %v2977_v6, 5 }
   0xf   : > { %s469_s18 = scalar_lea.vmem %s3753_s0, %s2782_s15  ;;  %s2834_s24 = smov 113   ;;  %vm595_vm0 = vcmp.lt.s32.totalorder %v2971_v4, 15  ;;  %vm494_vm1 = vcmp.lt.s32.totalorder %v2971_v4, 17  ;;  %vm508_vm2 = vcmp.lt.s32.totalorder %v2971_v4, 16  ;;  %vm647_vm4 = vcmp.lt.s32.totalorder %v2971_v4, 1 }
  0x10   : > { %v2935_v0 = vld [vmem:[%s469_s18] sm:$0xff]  ;;  %v2943_v1 = vld [vmem:[%s469_s18 + $0x8] sm:$0xff]  ;;  %s2835_s25 = smov 112   ;;  %s2836_s26 = smov 111   ;;  %vm740_vm6 = vcmp.lt.s32.totalorder %v2971_v4, 127  ;;  %v3062_v60 = vperm.slane %v2982_v7, 5 }
  0x11   : > { %488 = vrot.lane.b32.xlu1 %v2935_v0, %s2829_s19  ;;  %504 = vrot.lane.b32.xlu0 %v2935_v0, %s2830_s20  ;;  %v697_v40 = vpack.c.bf16 %v2935_v0, %v2935_v0  ;;  %v698_v41 = vpack.c.bf16 %v2943_v1, %v2943_v1  ;;  %v501_v48 = vld [vmem:[%s3755_s2] sm:$0xf]  ;;  %vm792_vm7 = vcmp.lt.s32.totalorder %v2971_v4, 113  ;;  %v3068_v63 = vperm.slane %v2977_v6, 6  ;;  %s2838_s15 = smov 32   ;;  %s2839_s16 = smov 30  }
  0x12   : > { %591 = vrot.lane.b32.xlu2 %v2935_v0, %s2831_s21  ;;  %vm844_vm8 = vcmp.lt.s32.totalorder %v2971_v4, 112  ;;  %vm896_vm9 = vcmp.lt.s32.totalorder %v2971_v4, 111  ;;  %s2840_s17 = smov 34   ;;  %s2841_s18 = smov 2   ;;  %vm1023_vm10 = vcmp.lt.s32.totalorder %v2971_v4, 32  ;;  %vm1008_vm11 = vcmp.lt.s32.totalorder %v2971_v4, 34 }
  0x13   : > { %v703_v53 = vsel %vm523_vm3, %v697_v40, 0  ;;  %v706_v54 = vsel %vm523_vm3, %v698_v41, 0  ;;  %v3120_v40 = vld [vmem:[%s3754_s1 + $0x18] sm:$0xff]  ;;  %s2842_s27 = smov 98   ;;  %s2843_s28 = smov 126   ;;  %vm1123_vm12 = vcmp.lt.s32.totalorder %v2971_v4, 30 }
  0x14   : > { %vm1185_vm13 = vcmp.lt.s32.totalorder %v2971_v4, 2  ;;  %vm1298_vm14 = vcmp.lt.s32.totalorder %v2971_v4, 126  ;;  %vm1360_vm15 = vcmp.lt.s32.totalorder %v2971_v4, 98 }
  0x19   : > { %490 = vrot.lane.b32.xlu1 %v2943_v1, %s2829_s19  ;;  %506 = vrot.lane.b32.xlu0 %v2943_v1, %s2830_s20 }
  0x1a   : > { %593 = vrot.lane.b32.xlu2 %v2943_v1, %s2831_s21 }
  0x21   : > { %645 = vrot.lane.b32.xlu1 %v2943_v1, %s2832_s22  ;;  %643 = vrot.lane.b32.xlu0 %v2935_v0, %s2832_s22 }
  0x22   : > { %736 = vrot.lane.b32.xlu2 %v2935_v0, %s2833_s23 }
  0x29   : > { %738 = vrot.lane.b32.xlu0 %v2943_v1, %s2833_s23  ;;  %788 = vrot.lane.b32.xlu1 %v2935_v0, %s2834_s24 }
  0x2a   : > { %790 = vrot.lane.b32.xlu2 %v2943_v1, %s2834_s24 }
  0x31   : > { %842 = vrot.lane.b32.xlu1 %v2943_v1, %s2835_s25  ;;  %840 = vrot.lane.b32.xlu0 %v2935_v0, %s2835_s25 }
  0x32   : > { %892 = vrot.lane.b32.xlu2 %v2935_v0, %s2836_s26  ;;  %v3071_v0 = vperm.slane %v2982_v7, 6 }
  0x39   : > { %894 = vrot.lane.b32.xlu0 %v2943_v1, %s2836_s26 }
  0x6c   : > { %v592_v2 = vpop.permute.xlu2 %591 }
  0x74   : > { %v594_v5 = vpop.permute.xlu2 %593 }
  0x75   : > { %v596_v12 = vsel %vm595_vm0, %v592_v2, %v594_v5  ;;  %v597_v13 = vsel %vm595_vm0, %v594_v5, %v592_v2 }
  0x76   : > { %v600_v14 = vmul.f32 %v2985_v10, %v597_v13  ;;  %v601_v15 = vmul.f32 %v2988_v11, %v596_v12 }
  0x78   : > { %v604_v22 = vpack.c.bf16 %v600_v14, %v600_v14  ;;  %v605_v23 = vpack.c.bf16 %v601_v15, %v601_v15 }
  0x7a   : > { %v610_v38 = vsel %vm523_vm3, %v604_v22, 0  ;;  %v613_v39 = vsel %vm523_vm3, %v605_v23, 0 }
  0x7c   : > { %v737_v46 = vpop.permute.xlu2 %736 }
  0x83   : > { %v489_v8 = vpop.permute.xlu1 %488  ;;  %v505_v9 = vpop.permute.xlu0 %504 }
  0x84   : > { %v791_v1 = vpop.permute.xlu2 %790 }
  0x8b   : > { %v491_v20 = vpop.permute.xlu1 %490  ;;  %v507_v21 = vpop.permute.xlu0 %506 }
  0x8c   : > { %v495_v24 = vsel %vm494_vm1, %v489_v8, %v491_v20  ;;  %v496_v25 = vsel %vm494_vm1, %v491_v20, %v489_v8  ;;  %v509_v26 = vsel %vm508_vm2, %v505_v9, %v507_v21  ;;  %v510_v27 = vsel %vm508_vm2, %v507_v21, %v505_v9 }
  0x8d   : > { %v513_v28 = vmul.f32 %v2999_v16, %v510_v27  ;;  %v514_v29 = vmul.f32 %v3002_v17, %v509_v26  ;;  %v499_v30 = vmul.f32 %v3005_v18, %v496_v25  ;;  %v500_v31 = vmul.f32 %v3008_v19, %v495_v24 }
  0x8e   : > { %v3089_v27 = vperm.slane %v2977_v6, 7 }
  0x8f   : > { %v517_v34 = vpack.c.bf16 %v513_v28, %v513_v28  ;;  %v518_v35 = vpack.c.bf16 %v514_v29, %v514_v29  ;;  %v502_v36 = vpack.c.bf16 %v499_v30, %v499_v30  ;;  %v503_v37 = vpack.c.bf16 %v500_v31, %v500_v31  ;;  %v2633_v29 = vld [vmem:[%s3755_s2 + $0x8] sm:$0xf]  ;;  %v2636_v30 = vld [vmem:[%s3755_s2 + $0xc] sm:$0xf] }
  0x90   : > { %v3092_v28 = vperm.slane %v2982_v7, 7 }
  0x91   : > { %v525_v42 = vsel %vm523_vm3, %v517_v34, 0  ;;  %v528_v43 = vsel %vm523_vm3, %v518_v35, 0  ;;  %v560_v44 = vsel %vm523_vm3, %v502_v36, 0  ;;  %v563_v45 = vsel %vm523_vm3, %v503_v37, 0 }
  0x92   : > { %537 = vmatpush.bf16.msra.mxu0 %v525_v42  ;;  %550 = vmatpush.bf16.msra.mxu1 %v528_v43 }
  0x93   : > { %572 = vmatpush.bf16.msra.mxu2 %v560_v44  ;;  %585 = vmatpush.bf16.msra.mxu3 %v563_v45  ;;  %v646_v49 = vpop.permute.xlu1 %645  ;;  %v644_v50 = vpop.permute.xlu0 %643 }
  0x94   : > { %v648_v51 = vsel %vm647_vm4, %v644_v50, %v646_v49  ;;  %v649_v52 = vsel %vm647_vm4, %v646_v49, %v644_v50  ;;  %v893_v45 = vpop.permute.xlu2 %892 }
  0x95   : > { %2629 = vmatmul.msk.bf16.vlgmr.msra.gmra.mxu0 %vm519_vm5, %v2628_v47  ;;  %2630 = vmatmul.msk.bf16.vlgmr.msra.gmra.mxu1 %vm519_vm5, %v2628_v47  ;;  %v652_v55 = vmul.f32 %v3024_v32, %v649_v52  ;;  %v653_v56 = vmul.f32 %v3027_v33, %v648_v51  ;;  %v3129_v47 = vperm.slane %v3120_v40, 0 }
  0x96   : > { %622 = vmatpush.bf16.msrb.mxu0 %v610_v38  ;;  %635 = vmatpush.bf16.msrb.mxu1 %v613_v39  ;;  %v3115_v39 = vld [vmem:[%s3754_s1 + $0x10] sm:$0xff] }
  0x97   : > { %2631 = vmatmul.msk.bf16.vlgmr.msra.gmra.mxu2 %vm519_vm5, %v501_v48  ;;  %2632 = vmatmul.msk.bf16.vlgmr.msra.gmra.mxu3 %vm519_vm5, %v501_v48  ;;  %v656_v57 = vpack.c.bf16 %v652_v55, %v652_v55  ;;  %v657_v58 = vpack.c.bf16 %v653_v56, %v653_v56  ;;  %v2639_v55 = vld [vmem:[%s3755_s2 + $0x10] sm:$0xf]  ;;  %v2642_v56 = vld [vmem:[%s3755_s2 + $0x14] sm:$0xf] }
  0x99   : > { %v662_v61 = vsel %vm523_vm3, %v656_v57, 0  ;;  %v665_v62 = vsel %vm523_vm3, %v657_v58, 0 }
  0x9a   : > { %715 = vmatpush.bf16.msra.mxu0 %v703_v53  ;;  %728 = vmatpush.bf16.msra.mxu1 %v706_v54 }
  0x9b   : > { %674 = vmatpush.bf16.msrb.mxu2 %v662_v61  ;;  %687 = vmatpush.bf16.msrb.mxu3 %v665_v62  ;;  %v739_v2 = vpop.permute.xlu0 %738  ;;  %v789_v3 = vpop.permute.xlu1 %788  ;;  %v944_v61 = vld [vmem:[%s3761_s8] sm:$0xff]  ;;  %v2837_v62 = vmov 0  }
  0x9c   : > { %v741_v5 = vsel %vm740_vm6, %v737_v46, %v739_v2  ;;  %v742_v8 = vsel %vm740_vm6, %v739_v2, %v737_v46  ;;  %v793_v9 = vsel %vm792_vm7, %v789_v3, %v791_v1  ;;  %v794_v12 = vsel %vm792_vm7, %v791_v1, %v789_v3  ;;  %2818 = vset.pattern.permute.xlu1 %v2837_v62  ;;  %v2645_v1 = vld [vmem:[%s3755_s2 + $0x18] sm:$0xf]  ;;  %v2648_v2 = vld [vmem:[%s3755_s2 + $0x1c] sm:$0xf]  ;;  %v2651_v3 = vld [vmem:[%s3755_s2 + $0x20] sm:$0xf] }
  0x9d   : > { %v745_v13 = vmul.f32 %v3059_v59, %v741_v5  ;;  %v746_v14 = vmul.f32 %v3062_v60, %v742_v8  ;;  %v797_v15 = vmul.f32 %v3068_v63, %v793_v9  ;;  %v798_v20 = vmul.f32 %v3071_v0, %v794_v12  ;;  %2820 = vset.pattern.permute.xlu0 %v2837_v62 }
  0x9e   : > { %v3126_v46 = vperm.slane %v3115_v39, 0  ;;  %947 = vperm.xlu1 %2818, %v944_v61   ;;  %2819 = vset.pattern.permute.xlu2 %v2837_v62 }
  0x9f   : > { %v749_v21 = vpack.c.bf16 %v745_v13, %v745_v13  ;;  %v750_v22 = vpack.c.bf16 %v746_v14, %v746_v14  ;;  %v801_v23 = vpack.c.bf16 %v797_v15, %v797_v15  ;;  %v802_v24 = vpack.c.bf16 %v798_v20, %v798_v20 }
  0xa1   : > { %v755_v25 = vsel %vm523_vm3, %v749_v21, 0  ;;  %v758_v26 = vsel %vm523_vm3, %v750_v22, 0  ;;  %v807_v7 = vsel %vm523_vm3, %v801_v23, 0  ;;  %v810_v36 = vsel %vm523_vm3, %v802_v24, 0 }
  0xa2   : > { %767 = vmatpush.bf16.msra.mxu2 %v755_v25  ;;  %780 = vmatpush.bf16.msra.mxu3 %v758_v26 }
  0xa3   : > { %v843_v31 = vpop.permute.xlu1 %842  ;;  %v841_v34 = vpop.permute.xlu0 %840 }
  0xa4   : > { %v845_v35 = vsel %vm844_vm8, %v841_v34, %v843_v31  ;;  %v846_v6 = vsel %vm844_vm8, %v843_v31, %v841_v34 }
  0xa5   : > { %2634 = vmatmul.msk.bf16.vlgmr.msrb.gmra.mxu0 %vm519_vm5, %v2633_v29  ;;  %2635 = vmatmul.msk.bf16.vlgmr.msrb.gmra.mxu1 %vm519_vm5, %v2633_v29  ;;  %v849_v37 = vmul.f32 %v3089_v27, %v845_v35  ;;  %v850_v38 = vmul.f32 %v3092_v28, %v846_v6 }
  0xa6   : > { %819 = vmatpush.bf16.msrb.mxu0 %v807_v7  ;;  %832 = vmatpush.bf16.msrb.mxu1 %v810_v36 }
  0xa7   : > { %2637 = vmatmul.msk.bf16.vlgmr.msrb.gmra.mxu2 %vm519_vm5, %v2636_v30  ;;  %2638 = vmatmul.msk.bf16.vlgmr.msrb.gmra.mxu3 %vm519_vm5, %v2636_v30  ;;  %v853_v41 = vpack.c.bf16 %v849_v37, %v849_v37  ;;  %v854_v42 = vpack.c.bf16 %v850_v38, %v850_v38 }
  0xa9   : > { %v859_v43 = vsel %vm523_vm3, %v853_v41, 0  ;;  %v862_v44 = vsel %vm523_vm3, %v854_v42, 0 }
  0xaa   : > { %871 = vmatpush.bf16.msrb.mxu2 %v859_v43  ;;  %884 = vmatpush.bf16.msrb.mxu3 %v862_v44 }
  0xab   : > { %v895_v48 = vpop.permute.xlu0 %894 }
  0xac   : > { %v897_v49 = vsel %vm896_vm9, %v893_v45, %v895_v48  ;;  %v898_v50 = vsel %vm896_vm9, %v895_v48, %v893_v45 }
  0xad   : > { %v901_v51 = vmul.f32 %v3126_v46, %v897_v49  ;;  %v902_v52 = vmul.f32 %v3129_v47, %v898_v50 }
  0xaf   : > { %v905_v53 = vpack.c.bf16 %v901_v51, %v901_v51  ;;  %v906_v54 = vpack.c.bf16 %v902_v52, %v902_v52 }
  0xb1   : > { %v911_v57 = vsel %vm523_vm3, %v905_v53, 0  ;;  %v914_v58 = vsel %vm523_vm3, %v906_v54, 0 }
  0xb5   : > { %2640 = vmatmul.msk.bf16.vlgmr.msra.gmra.mxu0 %vm519_vm5, %v2639_v55  ;;  %2641 = vmatmul.msk.bf16.vlgmr.msra.gmra.mxu1 %vm519_vm5, %v2639_v55 }
  0xb6   : > { %923 = vmatpush.bf16.msra.mxu0 %v911_v57  ;;  %936 = vmatpush.bf16.msra.mxu1 %v914_v58 }
  0xb7   : > { %2643 = vmatmul.msk.bf16.vlgmr.msra.gmra.mxu2 %vm519_vm5, %v2642_v56  ;;  %2644 = vmatmul.msk.bf16.vlgmr.msra.gmra.mxu3 %vm519_vm5, %v2642_v56 }
  0xc5   : > { %2646 = vmatmul.msk.bf16.vlgmr.msrb.gmra.mxu0 %vm519_vm5, %v2645_v1  ;;  %2647 = vmatmul.msk.bf16.vlgmr.msrb.gmra.mxu1 %vm519_vm5, %v2645_v1 }
  0xc7   : > { %2649 = vmatmul.msk.bf16.vlgmr.msrb.gmra.mxu2 %vm519_vm5, %v2648_v2  ;;  %2650 = vmatmul.msk.bf16.vlgmr.msrb.gmra.mxu3 %vm519_vm5, %v2648_v2 }
  0xd5   : > { %2652 = vmatmul.msk.bf16.vlgmr.msra.gmra.mxu0 %vm519_vm5, %v2651_v3  ;;  %2653 = vmatmul.msk.bf16.vlgmr.msra.gmra.mxu1 %vm519_vm5, %v2651_v3 }
 0x110   : > { %v948_v1 = vpop.permute.xlu1 %947 }
 0x112   : > { %v539_v5 = vpop.f32.mrf.mxu0  ;;  %v552_v8 = vpop.f32.mrf.mxu1 }
 0x11a   : > { %v574_v9 = vpop.f32.mrf.mxu2  ;;  %v587_v12 = vpop.f32.mrf.mxu3 }
 0x11b   : > { %v541_v13 = vpop.f32.mrf.mxu0  ;;  %v554_v14 = vpop.f32.mrf.mxu1  ;;  %v575_v43 = vadd.f32 %v574_v9, %v539_v5  ;;  %v588_v44 = vadd.f32 %v587_v12, %v552_v8 }
 0x122   : > { %v576_v15 = vpop.f32.mrf.mxu2  ;;  %v589_v20 = vpop.f32.mrf.mxu3 }
 0x123   : > { %v624_v21 = vpop.f32.mrf.mxu0  ;;  %v637_v22 = vpop.f32.mrf.mxu1 }
 0x124   : > { %v641_v45 = vadd.f32 %v624_v21, %v575_v43  ;;  %v642_v48 = vadd.f32 %v637_v22, %v588_v44 }
 0x12a   : > { %v676_v23 = vpop.f32.mrf.mxu2  ;;  %v689_v24 = vpop.f32.mrf.mxu3 }
 0x12b   : > { %v626_v25 = vpop.f32.mrf.mxu0  ;;  %v639_v26 = vpop.f32.mrf.mxu1  ;;  %v693_v49 = vadd.f32 %v676_v23, %v641_v45  ;;  %v694_v50 = vadd.f32 %v689_v24, %v642_v48 }
 0x12c   : > { %v3182_v26 = vld [vmem:[%s3754_s1 + $0x20] sm:$0xf] }
 0x132   : > { %v678_v29 = vpop.f32.mrf.mxu2  ;;  %v691_v30 = vpop.f32.mrf.mxu3 }
 0x133   : > { %v717_v31 = vpop.f32.mrf.mxu0  ;;  %v730_v34 = vpop.f32.mrf.mxu1  ;;  %v3187_v29 = vld [vmem:[%s3754_s1 + $0x28] sm:$0xf]  ;;  %v964_v30 = vsub.f32 1.0, %v3182_v26 }
 0x134   : > { %v734_v55 = vadd.f32 %v717_v31, %v693_v49  ;;  %v735_v56 = vadd.f32 %v730_v34, %v694_v50  ;;  %v965_v31 = vsub.f32 1.0, %v3187_v29  ;;  %v960_v34 = vperm.slane %v3182_v26, 2 }
 0x13a   : > { %v769_v35 = vpop.f32.mrf.mxu2  ;;  %v782_v6 = vpop.f32.mrf.mxu3 }
 0x13b   : > { %v719_v7 = vpop.f32.mrf.mxu0  ;;  %v732_v36 = vpop.f32.mrf.mxu1  ;;  %v786_v57 = vadd.f32 %v769_v35, %v734_v55  ;;  %v787_v58 = vadd.f32 %v782_v6, %v735_v56  ;;  %v961_v35 = vperm.slane %v3187_v29, 2 }
 0x13c   : > { %v972_v7 = vperm.slane %v964_v30, 2  ;;  %v973_v36 = vperm.slane %v965_v31, 2 }
 0x142   : > { %v771_v37 = vpop.f32.mrf.mxu2  ;;  %v784_v38 = vpop.f32.mrf.mxu3 }
 0x143   : > { %v821_v41 = vpop.f32.mrf.mxu0  ;;  %v834_v42 = vpop.f32.mrf.mxu1 }
 0x144   : > { %v838_v61 = vadd.f32 %v821_v41, %v786_v57  ;;  %v839_v62 = vadd.f32 %v834_v42, %v787_v58  ;;  %v986_v57 = vperm.slane %v3182_v26, 3  ;;  %v987_v58 = vperm.slane %v3187_v29, 3 }
 0x14a   : > { %v873_v51 = vpop.f32.mrf.mxu2  ;;  %v886_v52 = vpop.f32.mrf.mxu3 }
 0x14b   : > { %v823_v53 = vpop.f32.mrf.mxu0  ;;  %v836_v54 = vpop.f32.mrf.mxu1  ;;  %v890_v2 = vadd.f32 %v873_v51, %v838_v61  ;;  %v891_v3 = vadd.f32 %v886_v52, %v839_v62  ;;  %v996_v61 = vperm.slane %v964_v30, 3  ;;  %v997_v62 = vperm.slane %v965_v31, 3 }
 0x14c   : > { %v1026_v31 = vperm.slane %v3115_v39, 2 }
 0x152   : > { %v875_v13 = vpop.f32.mrf.mxu2  ;;  %v888_v5 = vpop.f32.mrf.mxu3 }
 0x153   : > { %v925_v8 = vpop.f32.mrf.mxu0  ;;  %v938_v9 = vpop.f32.mrf.mxu1 }
 0x154   : > { %v942_v12 = vadd.f32 %v925_v8, %v890_v2  ;;  %v943_v14 = vadd.f32 %v938_v9, %v891_v3 }
 0x156   : > { %v950_v15 = vadd.f32 %v948_v1, %v942_v12  ;;  %v951_v20 = vadd.f32 %v948_v1, %v943_v14 }
 0x158   : > { %v3167_v21 = vmax.f32 %v950_v15, 0.0  ;;  %v3169_v22 = vmax.f32 %v951_v20, 0.0 }
 0x15a   : > { %956 = vrot.lane.b32.xlu0 %v3169_v22, %s2833_s23  ;;  %966 = vrot.lane.b32.xlu1 %v3167_v21, %s2832_s22 }
 0x15b   : > { %954 = vrot.lane.b32.xlu2 %v3167_v21, %s2833_s23  ;;  %v927_v23 = vpop.f32.mrf.mxu0  ;;  %v940_v24 = vpop.f32.mrf.mxu1 }
 0x163   : > { %968 = vrot.lane.b32.xlu2 %v3169_v22, %s2832_s22 }
 0x1b5   : > { %v955_v25 = vpop.permute.xlu2 %954 }
 0x1bd   : > { %v969_v6 = vpop.permute.xlu2 %968 }
 0x1cc   : > { %v957_v37 = vpop.permute.xlu0 %956  ;;  %v967_v38 = vpop.permute.xlu1 %966 }
 0x1cd   : > { %v3195_v41 = vsel %vm740_vm6, %v955_v25, %v957_v37  ;;  %v3199_v42 = vsel %vm740_vm6, %v957_v37, %v955_v25  ;;  %v3203_v43 = vsel %vm647_vm4, %v967_v38, %v969_v6  ;;  %v3207_v44 = vsel %vm647_vm4, %v969_v6, %v967_v38 }
 0x1ce   : > { %3769 = vst [vmem:[#allocation2_spill] sm:$0xff] %v3199_v42  ;;  %v962_v45 = vmul.f32 %v960_v34, %v3195_v41  ;;  %v963_v48 = vmul.f32 %v961_v35, %v3199_v42  ;;  %v974_v49 = vmul.f32 %v972_v7, %v3207_v44  ;;  %v975_v50 = vmul.f32 %v973_v36, %v3203_v43 }
 0x1cf   : > { %v1027_v34 = vperm.slane %v3120_v40, 2 }
 0x1d0   : > { %v976_v51 = vadd.f32 %v974_v49, %v962_v45  ;;  %v977_v52 = vadd.f32 %v975_v50, %v963_v48  ;;  %v1011_v50 = vperm.slane %v3115_v39, 1 }
 0x1d2   : > { %v978_v53 = vmax.f32 %v3167_v21, %v976_v51  ;;  %v979_v54 = vmax.f32 %v3169_v22, %v977_v52  ;;  %v1012_v51 = vperm.slane %v3120_v40, 1 }
 0x1d4   : > { %990 = vrot.lane.b32.xlu2 %v978_v53, %s2830_s20  ;;  %980 = vrot.lane.b32.xlu0 %v978_v53, %s2835_s25 }
 0x1d5   : > { %982 = vrot.lane.b32.xlu1 %v979_v54, %s2835_s25 }
 0x1dc   : > { %992 = vrot.lane.b32.xlu0 %v979_v54, %s2830_s20 }
 0x22e   : > { %v991_v3 = vpop.permute.xlu2 %990 }
 0x246   : > { %v981_v55 = vpop.permute.xlu0 %980 }
 0x247   : > { %v983_v56 = vpop.permute.xlu1 %982 }
 0x248   : > { %v984_v1 = vsel %vm844_vm8, %v981_v55, %v983_v56  ;;  %v985_v2 = vsel %vm844_vm8, %v983_v56, %v981_v55  ;;  %v1127_v55 = vperm.slane %v3120_v40, 3  ;;  %v2785_v56 = vld [vmem:[%s3756_s3 + $0x8] sm:$0xff] }
 0x249   : > { %v988_v9 = vmul.f32 %v986_v57, %v984_v1  ;;  %v989_v12 = vmul.f32 %v987_v58, %v985_v2 }
 0x24e   : > { %v993_v13 = vpop.permute.xlu0 %992 }
 0x24f   : > { %v994_v5 = vsel %vm508_vm2, %v991_v3, %v993_v13  ;;  %v995_v8 = vsel %vm508_vm2, %v993_v13, %v991_v3 }
 0x250   : > { %v998_v14 = vmul.f32 %v996_v61, %v995_v8  ;;  %v999_v15 = vmul.f32 %v997_v62, %v994_v5 }
 0x252   : > { %v1000_v20 = vadd.f32 %v998_v14, %v988_v9  ;;  %v1001_v23 = vadd.f32 %v999_v15, %v989_v12 }
 0x254   : > { %v3229_v24 = vmax.f32 %v978_v53, %v1000_v20  ;;  %v3231_v25 = vmax.f32 %v979_v54, %v1001_v23  ;;  %v1126_v54 = vperm.slane %v3115_v39, 3 }
 0x256   : > { %1021 = vrot.lane.b32.xlu2 %v3231_v25, %s2838_s15  ;;  %1119 = vrot.lane.b32.xlu0 %v3229_v24, %s2839_s16  ;;  %v1247_v14 = vpack.c.bf16 %v3231_v25, %v3231_v25  ;;  %v1246_v15 = vpack.c.bf16 %v3229_v24, %v3229_v24 }
 0x257   : > { %1019 = vrot.lane.b32.xlu1 %v3229_v24, %s2838_s15  ;;  %s2844_s15 = smov 94  }
 0x25e   : > { %1004 = vrot.lane.b32.xlu2 %v3229_v24, %s2840_s17  ;;  %1006 = vrot.lane.b32.xlu0 %v3231_v25, %s2840_s17  ;;  %s2845_s17 = smov 96  }
 0x25f   : > { %1121 = vrot.lane.b32.xlu1 %v3231_v25, %s2839_s16 }
 0x266   : > { %1183 = vrot.lane.b32.xlu2 %v3231_v25, %s2841_s18  ;;  %1356 = vrot.lane.b32.xlu0 %v3229_v24, %s2842_s27 }
 0x267   : > { %1181 = vrot.lane.b32.xlu1 %v3229_v24, %s2841_s18 }
 0x26e   : > { %1294 = vrot.lane.b32.xlu2 %v3229_v24, %s2843_s28  ;;  %1296 = vrot.lane.b32.xlu0 %v3231_v25, %s2843_s28 }
 0x26f   : > { %1358 = vrot.lane.b32.xlu1 %v3231_v25, %s2842_s27 }
 0x276   : > { %1482 = vrot.lane.b32.xlu2 %v3231_v25, %s2844_s15  ;;  %1418 = vrot.lane.b32.xlu0 %v3229_v24, %s2845_s17 }
 0x277   : > { %1480 = vrot.lane.b32.xlu1 %v3229_v24, %s2844_s15  ;;  %v1188_v24 = vperm.slane %v3115_v39, 4  ;;  %s2783_s15 = sshll.u32 %s3772_s30, 3 }
 0x278   : > { %s478_s18 = scalar_lea.vmem %s3767_s14, %s2783_s15 }
 0x27f   : > { %1420 = vrot.lane.b32.xlu1 %v3231_v25, %s2845_s17 }
 0x2b0   : > { %v1022_v30 = vpop.permute.xlu2 %1021 }
 0x2b8   : > { %v1005_v37 = vpop.permute.xlu2 %1004 }
 0x2c0   : > { %v1184_v20 = vpop.permute.xlu2 %1183 }
 0x2c8   : > { %v1120_v35 = vpop.permute.xlu0 %1119 }
 0x2c9   : > { %v1020_v6 = vpop.permute.xlu1 %1019 }
 0x2ca   : > { %v1024_v7 = vsel %vm1023_vm10, %v1020_v6, %v1022_v30  ;;  %v1025_v36 = vsel %vm1023_vm10, %v1022_v30, %v1020_v6  ;;  %vm1484_vm10 = vcmp.lt.s32.totalorder %v2971_v4, 94 }
 0x2cb   : > { %v1028_v38 = vmul.f32 %v1026_v31, %v1025_v36  ;;  %v1029_v45 = vmul.f32 %v1027_v34, %v1024_v7  ;;  %v1189_v7 = vperm.slane %v3120_v40, 4 }
 0x2cd   : > { %v1033_v48 = vpack.c.bf16 %v1028_v38, %v1028_v38  ;;  %v1034_v49 = vpack.c.bf16 %v1029_v45, %v1029_v45  ;;  %v1257_v38 = vsel %vm523_vm3, %v1246_v15, 0 }
 0x2cf   : > { %v1044_v52 = vsel %vm523_vm3, %v1033_v48, 0  ;;  %v1047_v53 = vsel %vm523_vm3, %v1034_v49, 0 }
 0x2d0   : > { %1056 = vmatpush.bf16.msra.mxu2 %v1044_v52  ;;  %1070 = vmatpush.bf16.msra.mxu3 %v1047_v53  ;;  %v1007_v57 = vpop.permute.xlu0 %1006 }
 0x2d1   : > { %v1009_v58 = vsel %vm1008_vm11, %v1005_v37, %v1007_v57  ;;  %v1010_v61 = vsel %vm1008_vm11, %v1007_v57, %v1005_v37  ;;  %v1122_v62 = vpop.permute.xlu1 %1121  ;;  %v1260_v37 = vsel %vm523_vm3, %v1247_v14, 0  ;;  %vm1422_vm11 = vcmp.lt.s32.totalorder %v2971_v4, 96 }
 0x2d2   : > { %v1013_v1 = vmul.f32 %v1011_v50, %v1010_v61  ;;  %v1014_v2 = vmul.f32 %v1012_v51, %v1009_v58  ;;  %v1124_v3 = vsel %vm1123_vm12, %v1120_v35, %v1122_v62  ;;  %v1125_v13 = vsel %vm1123_vm12, %v1122_v62, %v1120_v35  ;;  %v2784_v35 = vld [vmem:[%s3756_s3] sm:$0xff] }
 0x2d3   : > { %v1128_v5 = vmul.f32 %v1126_v54, %v1125_v13  ;;  %v1129_v8 = vmul.f32 %v1127_v55, %v1124_v3  ;;  %2660 = vmatmul.msk.bf16.vlgmr.msra.gmra.mxu2 %vm519_vm5, %v2785_v56  ;;  %2661 = vmatmul.msk.bf16.vlgmr.msra.gmra.mxu3 %vm519_vm5, %v2785_v56  ;;  %v1301_v54 = vperm.slane %v3115_v39, 6  ;;  %v1302_v55 = vperm.slane %v3120_v40, 6  ;;  %v1295_v56 = vpop.permute.xlu2 %1294 }
 0x2d4   : > { %v1017_v9 = vpack.c.bf16 %v1013_v1, %v1013_v1  ;;  %v1018_v12 = vpack.c.bf16 %v1014_v2, %v1014_v2  ;;  %v1363_v61 = vperm.slane %v3115_v39, 7  ;;  %v1364_v62 = vperm.slane %v3120_v40, 7  ;;  %v2786_v1 = vld [vmem:[%s3756_s3 + $0x10] sm:$0xff] }
 0x2d5   : > { %v1133_v23 = vpack.c.bf16 %v1128_v5, %v1128_v5  ;;  %v1134_v30 = vpack.c.bf16 %v1129_v8, %v1129_v8  ;;  %vm1601_vm12 = vcmask 130048  }
 0x2d6   : > { %v1086_v31 = vsel %vm523_vm3, %v1017_v9, 0  ;;  %v1089_v34 = vsel %vm523_vm3, %v1018_v12, 0 }
 0x2d7   : > { %1098 = vmatpush.bf16.msrb.mxu0 %v1086_v31  ;;  %1112 = vmatpush.bf16.msrb.mxu1 %v1089_v34  ;;  %v1144_v25 = vsel %vm523_vm3, %v1133_v23, 0  ;;  %v1147_v6 = vsel %vm523_vm3, %v1134_v30, 0 }
 0x2d8   : > { %1156 = vmatpush.bf16.msrb.mxu2 %v1144_v25  ;;  %1170 = vmatpush.bf16.msrb.mxu3 %v1147_v6  ;;  %v1357_v36 = vpop.permute.xlu0 %1356 }
 0x2d9   : > { %v1182_v45 = vpop.permute.xlu1 %1181 }
 0x2da   : > { %v1186_v48 = vsel %vm1185_vm13, %v1182_v45, %v1184_v20  ;;  %v1187_v49 = vsel %vm1185_vm13, %v1184_v20, %v1182_v45  ;;  %2666 = vmatmul.msk.bf16.vlgmr.msrb.gmra.mxu0 %vm519_vm5, %v2784_v35  ;;  %2667 = vmatmul.msk.bf16.vlgmr.msrb.gmra.mxu1 %vm519_vm5, %v2784_v35  ;;  %v2787_v35 = vld [vmem:[%s3756_s3 + $0x18] sm:$0xff] }
 0x2db   : > { %v1190_v50 = vmul.f32 %v1188_v24, %v1187_v49  ;;  %v1191_v51 = vmul.f32 %v1189_v7, %v1186_v48  ;;  %v1487_v24 = vperm.slane %v3182_v26, 1  ;;  %v1488_v7 = vperm.slane %v3187_v29, 1 }
 0x2dc   : > { %1283 = vmatpush.bf16.msra.mxu3 %v1260_v37  ;;  %1269 = vmatpush.bf16.msra.mxu2 %v1257_v38 }
 0x2dd   : > { %v1195_v52 = vpack.c.bf16 %v1190_v50, %v1190_v50  ;;  %v1196_v53 = vpack.c.bf16 %v1191_v51, %v1191_v51 }
 0x2df   : > { %v1206_v57 = vsel %vm523_vm3, %v1195_v52, 0  ;;  %v1209_v58 = vsel %vm523_vm3, %v1196_v53, 0  ;;  %v1425_v52 = vperm.slane %v3182_v26, 0  ;;  %v1426_v53 = vperm.slane %v3187_v29, 0  ;;  %v1543_v29 = vld [vmem:[%s3762_s9 + $0x8] sm:$0xff] }
 0x2e0   : > { %1218 = vmatpush.bf16.msra.mxu0 %v1206_v57  ;;  %1232 = vmatpush.bf16.msra.mxu1 %v1209_v58  ;;  %v1297_v2 = vpop.permute.xlu0 %1296 }
 0x2e1   : > { %v1299_v3 = vsel %vm1298_vm14, %v1295_v56, %v1297_v2  ;;  %v1300_v13 = vsel %vm1298_vm14, %v1297_v2, %v1295_v56  ;;  %v1359_v5 = vpop.permute.xlu1 %1358  ;;  %v1542_v2 = vld [vmem:[%s3762_s9] sm:$0xff]  ;;  %1551 = vperm.xlu0 %2820, %v1543_v29  }
 0x2e2   : > { %v1303_v8 = vmul.f32 %v1301_v54, %v1299_v3  ;;  %v1304_v9 = vmul.f32 %v1302_v55, %v1300_v13  ;;  %v1361_v12 = vsel %vm1360_vm15, %v1357_v36, %v1359_v5  ;;  %v1362_v39 = vsel %vm1360_vm15, %v1359_v5, %v1357_v36  ;;  %v1483_v36 = vpop.permute.xlu2 %1482  ;;  %v2788_v54 = vld [vmem:[%s3756_s3 + $0x20] sm:$0xff]  ;;  %1546 = vperm.xlu2 %2819, %v1542_v2   ;;  %v2789_v5 = vld [vmem:[%s3756_s3 + $0x28] sm:$0xff] }
 0x2e3   : > { %v1365_v14 = vmul.f32 %v1363_v61, %v1361_v12  ;;  %v1366_v40 = vmul.f32 %v1364_v62, %v1362_v39  ;;  %2674 = vmatmul.msk.bf16.vlgmr.msrb.gmra.mxu2 %vm519_vm5, %v2786_v1  ;;  %2675 = vmatmul.msk.bf16.vlgmr.msrb.gmra.mxu3 %vm519_vm5, %v2786_v1  ;;  %v2790_v12 = vld [vmem:[%s3756_s3 + $0x30] sm:$0xff]  ;;  %v2791_v39 = vld [vmem:[%s3756_s3 + $0x38] sm:$0xff] }
 0x2e4   : > { %v1308_v15 = vpack.c.bf16 %v1303_v8, %v1303_v8  ;;  %v1309_v20 = vpack.c.bf16 %v1304_v9, %v1304_v9 }
 0x2e5   : > { %v1370_v23 = vpack.c.bf16 %v1365_v14, %v1365_v14  ;;  %v1371_v30 = vpack.c.bf16 %v1366_v40, %v1366_v40  ;;  %v2792_v14 = vld [vmem:[%s3756_s3 + $0x40] sm:$0xff] }
 0x2e6   : > { %v1319_v31 = vsel %vm523_vm3, %v1308_v15, 0  ;;  %v1322_v34 = vsel %vm523_vm3, %v1309_v20, 0 }
 0x2e7   : > { %1331 = vmatpush.bf16.msrb.mxu0 %v1319_v31  ;;  %1345 = vmatpush.bf16.msrb.mxu1 %v1322_v34  ;;  %v1381_v25 = vsel %vm523_vm3, %v1370_v23, 0  ;;  %v1384_v6 = vsel %vm523_vm3, %v1371_v30, 0 }
 0x2e8   : > { %1393 = vmatpush.bf16.msrb.mxu2 %v1381_v25  ;;  %1407 = vmatpush.bf16.msrb.mxu3 %v1384_v6  ;;  %v1419_v55 = vpop.permute.xlu0 %1418 }
 0x2e9   : > { %v1481_v37 = vpop.permute.xlu1 %1480 }
 0x2ea   : > { %v1485_v38 = vsel %vm1484_vm10, %v1481_v37, %v1483_v36  ;;  %v1486_v45 = vsel %vm1484_vm10, %v1483_v36, %v1481_v37  ;;  %2682 = vmatmul.msk.bf16.vlgmr.msra.gmra.mxu0 %vm519_vm5, %v2787_v35  ;;  %2683 = vmatmul.msk.bf16.vlgmr.msra.gmra.mxu1 %vm519_vm5, %v2787_v35 }
 0x2eb   : > { %v1489_v48 = vmul.f32 %v1487_v24, %v1485_v38  ;;  %v1490_v49 = vmul.f32 %v1488_v7, %v1486_v45 }
 0x2ed   : > { %v1494_v50 = vpack.c.bf16 %v1489_v48, %v1489_v48  ;;  %v1495_v51 = vpack.c.bf16 %v1490_v49, %v1490_v49 }
 0x2ef   : > { %v1505_v1 = vsel %vm523_vm3, %v1494_v50, 0  ;;  %v1508_v26 = vsel %vm523_vm3, %v1495_v51, 0 }
 0x2f1   : > { %v1421_v56 = vpop.permute.xlu1 %1420 }
 0x2f2   : > { %v1423_v57 = vsel %vm1422_vm11, %v1419_v55, %v1421_v56  ;;  %v1424_v58 = vsel %vm1422_vm11, %v1421_v56, %v1419_v55 }
 0x2f3   : > { %v1427_v61 = vmul.f32 %v1425_v52, %v1423_v57  ;;  %v1428_v62 = vmul.f32 %v1426_v53, %v1424_v58  ;;  %2690 = vmatmul.msk.bf16.vlgmr.msra.gmra.mxu2 %vm519_vm5, %v2788_v54  ;;  %2691 = vmatmul.msk.bf16.vlgmr.msra.gmra.mxu3 %vm519_vm5, %v2788_v54 }
 0x2f4   : > { %1517 = vmatpush.bf16.msra.mxu2 %v1505_v1  ;;  %1531 = vmatpush.bf16.msra.mxu3 %v1508_v26 }
 0x2f5   : > { %v1432_v3 = vpack.c.bf16 %v1427_v61, %v1427_v61  ;;  %v1433_v13 = vpack.c.bf16 %v1428_v62, %v1428_v62 }
 0x2f7   : > { %v1443_v8 = vsel %vm523_vm3, %v1432_v3, 0  ;;  %v1446_v9 = vsel %vm523_vm3, %v1433_v13, 0 }
 0x2f8   : > { %1455 = vmatpush.bf16.msra.mxu0 %v1443_v8  ;;  %1469 = vmatpush.bf16.msra.mxu1 %v1446_v9 }
 0x2fa   : > { %2698 = vmatmul.msk.bf16.vlgmr.msrb.gmra.mxu0 %vm519_vm5, %v2789_v5  ;;  %2699 = vmatmul.msk.bf16.vlgmr.msrb.gmra.mxu1 %vm519_vm5, %v2789_v5 }
 0x303   : > { %2706 = vmatmul.msk.bf16.vlgmr.msrb.gmra.mxu2 %vm519_vm5, %v2790_v12  ;;  %2707 = vmatmul.msk.bf16.vlgmr.msrb.gmra.mxu3 %vm519_vm5, %v2790_v12 }
 0x30a   : > { %2714 = vmatmul.msk.bf16.vlgmr.msra.gmra.mxu0 %vm519_vm5, %v2791_v39  ;;  %2715 = vmatmul.msk.bf16.vlgmr.msra.gmra.mxu1 %vm519_vm5, %v2791_v39 }
 0x313   : > { %2722 = vmatmul.msk.bf16.vlgmr.msra.gmra.mxu2 %vm519_vm5, %v2792_v14  ;;  %2723 = vmatmul.msk.bf16.vlgmr.msra.gmra.mxu3 %vm519_vm5, %v2792_v14 }
 0x356   : > { %v1058_v40 = vpop.f32.mrf.mxu2  ;;  %v1072_v15 = vpop.f32.mrf.mxu3 }
 0x357   : > { %v1100_v20 = vpop.f32.mrf.mxu0  ;;  %v1114_v23 = vpop.f32.mrf.mxu1 }
 0x358   : > { %v1101_v54 = vadd.f32 %v1100_v20, %v1058_v40  ;;  %v1115_v55 = vadd.f32 %v1114_v23, %v1072_v15 }
 0x35e   : > { %v1060_v30 = vpop.f32.mrf.mxu2  ;;  %v1074_v31 = vpop.f32.mrf.mxu3 }
 0x35f   : > { %v1102_v34 = vpop.f32.mrf.mxu0  ;;  %v1116_v35 = vpop.f32.mrf.mxu1 }
 0x360   : > { %v1103_v2 = vadd.f32 %v1102_v34, %v1060_v30  ;;  %v1117_v3 = vadd.f32 %v1116_v35, %v1074_v31  ;;  %v1547_v30 = vpop.permute.xlu2 %1546 }
 0x366   : > { %v1158_v25 = vpop.f32.mrf.mxu2  ;;  %v1172_v6 = vpop.f32.mrf.mxu3 }
 0x367   : > { %v1220_v24 = vpop.f32.mrf.mxu0  ;;  %v1234_v7 = vpop.f32.mrf.mxu1  ;;  %v1177_v56 = vadd.f32 %v1158_v25, %v1101_v54  ;;  %v1178_v57 = vadd.f32 %v1172_v6, %v1115_v55 }
 0x369   : > { %v1239_v26 = vadd.f32 %v1220_v24, %v1177_v56  ;;  %v1240_v29 = vadd.f32 %v1234_v7, %v1178_v57 }
 0x36e   : > { %v1160_v36 = vpop.f32.mrf.mxu2  ;;  %v1174_v37 = vpop.f32.mrf.mxu3 }
 0x36f   : > { %v1222_v38 = vpop.f32.mrf.mxu0  ;;  %v1236_v45 = vpop.f32.mrf.mxu1  ;;  %v1179_v8 = vadd.f32 %v1160_v36, %v1103_v2  ;;  %v1180_v9 = vadd.f32 %v1174_v37, %v1117_v3 }
 0x371   : > { %v1241_v20 = vadd.f32 %v1222_v38, %v1179_v8  ;;  %v1242_v23 = vadd.f32 %v1236_v45, %v1180_v9 }
 0x376   : > { %v1271_v48 = vpop.f32.mrf.mxu2  ;;  %v1285_v49 = vpop.f32.mrf.mxu3 }
 0x377   : > { %v1333_v50 = vpop.f32.mrf.mxu0  ;;  %v1347_v51 = vpop.f32.mrf.mxu1  ;;  %v1290_v13 = vadd.f32 %v1271_v48, %v1239_v26  ;;  %v1291_v5 = vadd.f32 %v1285_v49, %v1240_v29 }
 0x379   : > { %v1352_v14 = vadd.f32 %v1333_v50, %v1290_v13  ;;  %v1353_v42 = vadd.f32 %v1347_v51, %v1291_v5 }
 0x37e   : > { %v1273_v52 = vpop.f32.mrf.mxu2  ;;  %v1287_v53 = vpop.f32.mrf.mxu3 }
 0x37f   : > { %v1335_v58 = vpop.f32.mrf.mxu0  ;;  %v1349_v61 = vpop.f32.mrf.mxu1  ;;  %v1292_v54 = vadd.f32 %v1273_v52, %v1241_v20  ;;  %v1293_v55 = vadd.f32 %v1287_v53, %v1242_v23 }
 0x381   : > { %v1354_v35 = vadd.f32 %v1335_v58, %v1292_v54  ;;  %v1355_v36 = vadd.f32 %v1349_v61, %v1293_v55  ;;  %v1552_v58 = vpop.permute.xlu0 %1551 }
 0x386   : > { %v1395_v62 = vpop.f32.mrf.mxu2  ;;  %v1409_v1 = vpop.f32.mrf.mxu3 }
 0x387   : > { %v1457_v40 = vpop.f32.mrf.mxu0  ;;  %v1471_v15 = vpop.f32.mrf.mxu1  ;;  %v1414_v25 = vadd.f32 %v1395_v62, %v1352_v14  ;;  %v1415_v6 = vadd.f32 %v1409_v1, %v1353_v42 }
 0x389   : > { %v1476_v24 = vadd.f32 %v1457_v40, %v1414_v25  ;;  %v1477_v7 = vadd.f32 %v1471_v15, %v1415_v6  ;;  %v2432_v40 = vld [vmem:[%s3764_s11] sm:$0xf] }
 0x38a   : > { %v2419_v15 = vld [vmem:[%s3763_s10] sm:$0xff] }
 0x38e   : > { %v1397_v12 = vpop.f32.mrf.mxu2  ;;  %v1411_v39 = vpop.f32.mrf.mxu3 }
 0x38f   : > { %v1416_v49 = vadd.f32 %v1397_v12, %v1354_v35  ;;  %v1417_v50 = vadd.f32 %v1411_v39, %v1355_v36  ;;  %v1459_v57 = vpop.f32.mrf.mxu0  ;;  %v1473_v38 = vpop.f32.mrf.mxu1 }
 0x391   : > { %v1478_v52 = vadd.f32 %v1459_v57, %v1416_v49  ;;  %v1479_v53 = vadd.f32 %v1473_v38, %v1417_v50 }
 0x396   : > { %v1519_v31 = vpop.f32.mrf.mxu2  ;;  %v1533_v34 = vpop.f32.mrf.mxu3 }
 0x397   : > { %v1538_v37 = vadd.f32 %v1519_v31, %v1476_v24  ;;  %v1539_v48 = vadd.f32 %v1533_v34, %v1477_v7 }
 0x399   : > { %v1554_v51 = vadd.f32 %v1547_v30, %v1538_v37  ;;  %v1555_v56 = vadd.f32 %v1547_v30, %v1539_v48  ;;  %v1578_v37 = vld [vmem:[%s3757_s4] sm:$0xf] }
 0x39b   : > { %v3354_v45 = vmax.f32 %v1554_v51, 0.0  ;;  %v3356_v42 = vmax.f32 %v1555_v56, 0.0 }
 0x39d   : > { %1585 = vrot.lane.b32.xlu2 %v3356_v42, %s2830_s20  ;;  %1581 = vrot.lane.b32.xlu0 %v3354_v45, %s2830_s20 }
 0x39e   : > { %1562 = vrot.lane.b32.xlu1 %v3354_v45, %s2829_s19  ;;  %v1521_v61 = vpop.f32.mrf.mxu2  ;;  %v1535_v62 = vpop.f32.mrf.mxu3 }
 0x39f   : > { %v1540_v1 = vadd.f32 %v1521_v61, %v1478_v52  ;;  %v1541_v26 = vadd.f32 %v1535_v62, %v1479_v53 }
 0x3a1   : > { %v1556_v29 = vadd.f32 %v1552_v58, %v1540_v1  ;;  %v1557_v2 = vadd.f32 %v1552_v58, %v1541_v26 }
 0x3a3   : > { %v3364_v3 = vmax.f32 %v1556_v29, 0.0  ;;  %v3366_v13 = vmax.f32 %v1557_v2, 0.0 }
 0x3a5   : > { %1564 = vrot.lane.b32.xlu2 %v3364_v3, %s2829_s19  ;;  %1587 = vrot.lane.b32.xlu0 %v3366_v13, %s2830_s20 }
 0x3a6   : > { %1566 = vrot.lane.b32.xlu1 %v3356_v42, %s2829_s19 }
 0x3ad   : > { %1568 = vrot.lane.b32.xlu2 %v3366_v13, %s2829_s19  ;;  %1715 = vrot.lane.b32.xlu0 %v3356_v42, %s2832_s22 }
 0x3ae   : > { %1711 = vrot.lane.b32.xlu1 %v3354_v45, %s2832_s22 }
 0x3b5   : > { %1660 = vrot.lane.b32.xlu2 %v3354_v45, %s2831_s21  ;;  %1662 = vrot.lane.b32.xlu0 %v3364_v3, %s2831_s21 }
 0x3b6   : > { %1583 = vrot.lane.b32.xlu1 %v3364_v3, %s2830_s20 }
 0x3bd   : > { %1713 = vrot.lane.b32.xlu2 %v3364_v3, %s2832_s22  ;;  %1797 = vrot.lane.b32.xlu0 %v3354_v45, %s2833_s23 }
 0x3be   : > { %1717 = vrot.lane.b32.xlu1 %v3366_v13, %s2832_s22 }
 0x3c5   : > { %1666 = vrot.lane.b32.xlu2 %v3366_v13, %s2831_s21  ;;  %1803 = vrot.lane.b32.xlu0 %v3366_v13, %s2833_s23 }
 0x3c6   : > { %1664 = vrot.lane.b32.xlu1 %v3356_v42, %s2831_s21 }
 0x3cd   : > { %1801 = vrot.lane.b32.xlu2 %v3356_v42, %s2833_s23  ;;  %1903 = vrot.lane.b32.xlu0 %v3356_v42, %s2835_s25 }
 0x3ce   : > { %1799 = vrot.lane.b32.xlu1 %v3364_v3, %s2833_s23 }
 0x3d5   : > { %1848 = vrot.lane.b32.xlu2 %v3354_v45, %s2834_s24  ;;  %1850 = vrot.lane.b32.xlu0 %v3364_v3, %s2834_s24 }
 0x3d6   : > { %1899 = vrot.lane.b32.xlu1 %v3354_v45, %s2835_s25 }
 0x3dd   : > { %1901 = vrot.lane.b32.xlu2 %v3364_v3, %s2835_s25  ;;  %2012 = vrot.lane.b32.xlu0 %v3167_v21, %s2830_s20 }
 0x3de   : > { %1905 = vrot.lane.b32.xlu1 %v3366_v13, %s2835_s25 }
 0x3e5   : > { %1854 = vrot.lane.b32.xlu2 %v3366_v13, %s2834_s24  ;;  %1952 = vrot.lane.b32.xlu0 %v3364_v3, %s2836_s26 }
 0x3e6   : > { %1852 = vrot.lane.b32.xlu1 %v3356_v42, %s2834_s24 }
 0x3ed   : > { %1950 = vrot.lane.b32.xlu2 %v3354_v45, %s2836_s26  ;;  %2094 = vrot.lane.b32.xlu0 %v3167_v21, %s2831_s21 }
 0x3ee   : > { %2014 = vrot.lane.b32.xlu1 %v3169_v22, %s2830_s20 }
 0x3f5   : > { %1956 = vrot.lane.b32.xlu2 %v3366_v13, %s2836_s26  ;;  %2003 = vrot.lane.b32.xlu0 %v3169_v22, %s2829_s19 }
 0x3f6   : > { %1954 = vrot.lane.b32.xlu1 %v3356_v42, %s2836_s26 }
 0x3f7   : > { %v1586_v5 = vpop.permute.xlu2 %1585 }
 0x3fd   : > { %2001 = vrot.lane.b32.xlu2 %v3167_v21, %s2829_s19  ;;  %2368 = vrot.lane.b32.xlu0 %v3167_v21, %s2836_s26 }
 0x3fe   : > { %2096 = vrot.lane.b32.xlu1 %v3169_v22, %s2831_s21  ;;  %s2625_s21 = sshll.u32 %s3772_s30, 2 }
 0x3ff   : > { %v1565_v8 = vpop.permute.xlu2 %1564 }
 0x405   : > { %2272 = vrot.lane.b32.xlu2 %v3169_v22, %s2834_s24  ;;  %2321 = vrot.lane.b32.xlu0 %v3169_v22, %s2835_s25 }
 0x406   : > { %2270 = vrot.lane.b32.xlu1 %v3167_v21, %s2834_s24 }
 0x407   : > { %v1569_v9 = vpop.permute.xlu2 %1568 }
 0x408   : > { %v1571_v20 = vsel %vm494_vm1, %v1565_v8, %v1569_v9  ;;  %v1573_v23 = vsel %vm494_vm1, %v1569_v9, %v1565_v8 }
 0x409   : > { %v1576_v7 = vmul.f32 %v1573_v23, %v3005_v18  ;;  %v1577_v30 = vmul.f32 %v1571_v20, %v3008_v19 }
 0x40d   : > { %2319 = vrot.lane.b32.xlu2 %v3167_v21, %s2835_s25 }
 0x40e   : > { %2370 = vrot.lane.b32.xlu1 %v3169_v22, %s2836_s26  ;;  %s473_s26 = scalar_lea.vmem %s3766_s13, %s2625_s21 }
 0x40f   : > { %v3450_v12 = vpop.permute.xlu2 %1660  ;;  %v1582_v39 = vpop.permute.xlu0 %1581 }
 0x410   : > { %v1563_v14 = vpop.permute.xlu1 %1562  ;;  %v1589_v51 = vsel %vm508_vm2, %v1582_v39, %v1586_v5  ;;  %v1591_v56 = vsel %vm508_vm2, %v1586_v5, %v1582_v39  ;;  %v2724_v5 = vld [vmem:[%s3757_s4 + $0x4] sm:$0xf] }
 0x411   : > { %v1593_v58 = vmul.f32 %v1591_v56, %v2999_v16  ;;  %v1594_v61 = vmul.f32 %v1589_v51, %v3002_v17 }
 0x415   : > { %2435 = vperm.xlu2 %2819, %v2432_v40  }
 0x416   : > { %2422 = vperm.xlu1 %2818, %v2419_v15  }
 0x417   : > { %v1714_v25 = vpop.permute.xlu2 %1713  ;;  %v1588_v6 = vpop.permute.xlu0 %1587 }
 0x418   : > { %v1567_v54 = vpop.permute.xlu1 %1566 }
 0x419   : > { %v1570_v55 = vsel %vm494_vm1, %v1563_v14, %v1567_v54  ;;  %v1572_v24 = vsel %vm494_vm1, %v1567_v54, %v1563_v14 }
 0x41a   : > { %v1574_v31 = vmul.f32 %v1572_v24, %v3005_v18  ;;  %v1575_v34 = vmul.f32 %v1570_v55, %v3008_v19 }
 0x41c   : > { %v1579_v35 = vpack.c.bf16 %v1576_v7, %v1574_v31  ;;  %v1580_v36 = vpack.c.bf16 %v1577_v30, %v1575_v34 }
 0x41e   : > { %1641 = vmatpush.bf16.msrb.mxu2 %v1579_v35  ;;  %1654 = vmatpush.bf16.msrb.mxu3 %v1580_v36 }
 0x41f   : > { %v1716_v48 = vpop.permute.xlu0 %1715  ;;  %v1667_v50 = vpop.permute.xlu2 %1666 }
 0x420   : > { %v1712_v49 = vpop.permute.xlu1 %1711 }
 0x421   : > { %2727 = vmatmul.msk.bf16.vlgmr.msrb.gmra.mxu2 %vm1601_vm12, %v1578_v37  ;;  %2728 = vmatmul.msk.bf16.vlgmr.msrb.gmra.mxu3 %vm1601_vm12, %v1578_v37  ;;  %v1719_v8 = vsel %vm647_vm4, %v1712_v49, %v1716_v48  ;;  %v1721_v9 = vsel %vm647_vm4, %v1716_v48, %v1712_v49 }
 0x422   : > { %v1723_v20 = vmul.f32 %v1721_v9, %v3024_v32  ;;  %v1724_v23 = vmul.f32 %v1719_v8, %v3027_v33 }
 0x427   : > { %v1663_v57 = vpop.permute.xlu0 %1662  ;;  %v1802_v26 = vpop.permute.xlu2 %1801 }
 0x428   : > { %v1584_v38 = vpop.permute.xlu1 %1583  ;;  %v1669_v30 = vsel %vm595_vm0, %v1663_v57, %v1667_v50  ;;  %v1671_v31 = vsel %vm595_vm0, %v1667_v50, %v1663_v57 }
 0x429   : > { %v1590_v52 = vsel %vm508_vm2, %v1584_v38, %v1588_v6  ;;  %v1592_v53 = vsel %vm508_vm2, %v1588_v6, %v1584_v38  ;;  %v1674_v48 = vmul.f32 %v1671_v31, %v2985_v10  ;;  %v1675_v49 = vmul.f32 %v1669_v30, %v2988_v11 }
 0x42a   : > { %v1595_v62 = vmul.f32 %v1592_v53, %v2999_v16  ;;  %v1596_v1 = vmul.f32 %v1590_v52, %v3002_v17  ;;  %v1764_v38 = vpack.c.bf16 %v3364_v3, %v3354_v45  ;;  %v2729_v52 = vld [vmem:[%s3757_s4 + $0x8] sm:$0xf] }
 0x42c   : > { %v1599_v29 = vpack.c.bf16 %v1595_v62, %v1593_v58  ;;  %v1600_v2 = vpack.c.bf16 %v1596_v1, %v1594_v61 }
 0x42e   : > { %1612 = vmatpush.bf16.msrb.mxu0 %v1599_v29  ;;  %1625 = vmatpush.bf16.msrb.mxu1 %v1600_v2 }
 0x42f   : > { %v1798_v39 = vpop.permute.xlu0 %1797  ;;  %v3504_v7 = vpop.permute.xlu2 %1848 }
 0x430   : > { %v1718_v14 = vpop.permute.xlu1 %1717  ;;  %v1805_v53 = vsel %vm740_vm6, %v1798_v39, %v1802_v26  ;;  %v1807_v58 = vsel %vm740_vm6, %v1802_v26, %v1798_v39 }
 0x431   : > { %v1720_v40 = vsel %vm647_vm4, %v1714_v25, %v1718_v14  ;;  %v1722_v15 = vsel %vm647_vm4, %v1718_v14, %v1714_v25  ;;  %2725 = vmatmul.msk.bf16.vlgmr.msrb.gmra.mxu0 %vm1601_vm12, %v2724_v5  ;;  %2726 = vmatmul.msk.bf16.vlgmr.msrb.gmra.mxu1 %vm1601_vm12, %v2724_v5  ;;  %v2732_v25 = vld [vmem:[%s3757_s4 + $0xc] sm:$0xf]  ;;  %v1809_v5 = vmul.f32 %v1805_v53, %v3059_v59 }
 0x432   : > { %v1725_v6 = vmul.f32 %v1722_v15, %v3024_v32  ;;  %v1726_v54 = vmul.f32 %v1720_v40, %v3027_v33  ;;  %v1810_v8 = vmul.f32 %v1807_v58, %v3062_v60  ;;  %v2738_v40 = vld [vmem:[%s3757_s4 + $0x14] sm:$0xf] }
 0x434   : > { %v1729_v55 = vpack.c.bf16 %v1725_v6, %v1723_v20  ;;  %v1730_v24 = vpack.c.bf16 %v1726_v54, %v1724_v23  ;;  %v2735_v6 = vld [vmem:[%s3757_s4 + $0x10] sm:$0xf] }
 0x436   : > { %1741 = vmatpush.bf16.msra.mxu2 %v1729_v55  ;;  %1754 = vmatpush.bf16.msra.mxu3 %v1730_v24 }
 0x437   : > { %v1804_v34 = vpop.permute.xlu0 %1803  ;;  %v1902_v61 = vpop.permute.xlu2 %1901 }
 0x438   : > { %v1665_v35 = vpop.permute.xlu1 %1664 }
 0x439   : > { %v1668_v36 = vsel %vm595_vm0, %v3450_v12, %v1665_v35  ;;  %v1670_v37 = vsel %vm595_vm0, %v1665_v35, %v3450_v12  ;;  %2733 = vmatmul.msk.bf16.vlgmr.msra.gmra.mxu2 %vm1601_vm12, %v2732_v25  ;;  %2734 = vmatmul.msk.bf16.vlgmr.msra.gmra.mxu3 %vm1601_vm12, %v2732_v25  ;;  %v1765_v12 = vpack.c.bf16 %v3366_v13, %v3356_v42 }
 0x43a   : > { %v1672_v50 = vmul.f32 %v1670_v37, %v2985_v10  ;;  %v1673_v51 = vmul.f32 %v1668_v36, %v2988_v11 }
 0x43c   : > { %v1678_v56 = vpack.c.bf16 %v1674_v48, %v1672_v50  ;;  %v1679_v57 = vpack.c.bf16 %v1675_v49, %v1673_v51  ;;  %v2744_v51 = vld [vmem:[%s3757_s4 + $0x1c] sm:$0xf] }
 0x43e   : > { %1690 = vmatpush.bf16.msra.mxu0 %v1678_v56  ;;  %1703 = vmatpush.bf16.msra.mxu1 %v1679_v57 }
 0x43f   : > { %v1904_v62 = vpop.permute.xlu0 %1903  ;;  %v1855_v23 = vpop.permute.xlu2 %1854 }
 0x440   : > { %v1800_v1 = vpop.permute.xlu1 %1799 }
 0x441   : > { %v1806_v29 = vsel %vm740_vm6, %v1800_v1, %v1804_v34  ;;  %v1808_v2 = vsel %vm740_vm6, %v1804_v34, %v1800_v1  ;;  %2730 = vmatmul.msk.bf16.vlgmr.msra.gmra.mxu0 %vm1601_vm12, %v2729_v52  ;;  %2731 = vmatmul.msk.bf16.vlgmr.msra.gmra.mxu1 %vm1601_vm12, %v2729_v52 }
 0x442   : > { %1776 = vmatpush.bf16.msrb.mxu0 %v1764_v38  ;;  %1789 = vmatpush.bf16.msrb.mxu1 %v1765_v12  ;;  %v1811_v9 = vmul.f32 %v1806_v29, %v3059_v59  ;;  %v1812_v26 = vmul.f32 %v1808_v2, %v3062_v60 }
 0x444   : > { %v1815_v39 = vpack.c.bf16 %v1811_v9, %v1809_v5  ;;  %v1816_v14 = vpack.c.bf16 %v1812_v26, %v1810_v8 }
 0x446   : > { %1827 = vmatpush.bf16.msrb.mxu2 %v1815_v39  ;;  %1840 = vmatpush.bf16.msrb.mxu3 %v1816_v14 }
 0x447   : > { %v1851_v15 = vpop.permute.xlu0 %1850  ;;  %v1951_v48 = vpop.permute.xlu2 %1950 }
 0x448   : > { %v1900_v20 = vpop.permute.xlu1 %1899  ;;  %v1857_v56 = vsel %vm792_vm7, %v1851_v15, %v1855_v23  ;;  %v1859_v57 = vsel %vm792_vm7, %v1855_v23, %v1851_v15 }
 0x449   : > { %2739 = vmatmul.msk.bf16.vlgmr.msrb.gmra.mxu2 %vm1601_vm12, %v2738_v40  ;;  %2740 = vmatmul.msk.bf16.vlgmr.msrb.gmra.mxu3 %vm1601_vm12, %v2738_v40  ;;  %v1907_v54 = vsel %vm844_vm8, %v1900_v20, %v1904_v62  ;;  %v1909_v55 = vsel %vm844_vm8, %v1904_v62, %v1900_v20  ;;  %v1862_v58 = vmul.f32 %v1857_v56, %v3068_v63 }
 0x44a   : > { %v1911_v34 = vmul.f32 %v1907_v54, %v3089_v27  ;;  %v1912_v35 = vmul.f32 %v1909_v55, %v3092_v28  ;;  %v2143_v55 = vmul.f32 %v3207_v44, %v3024_v32 }
 0x44f   : > { %v2013_v24 = vpop.permute.xlu0 %2012  ;;  %v1957_v5 = vpop.permute.xlu2 %1956 }
 0x450   : > { %v1906_v25 = vpop.permute.xlu1 %1905 }
 0x451   : > { %v1908_v30 = vsel %vm844_vm8, %v1902_v61, %v1906_v25  ;;  %v1910_v31 = vsel %vm844_vm8, %v1906_v25, %v1902_v61  ;;  %2736 = vmatmul.msk.bf16.vlgmr.msrb.gmra.mxu0 %vm1601_vm12, %v2735_v6  ;;  %2737 = vmatmul.msk.bf16.vlgmr.msrb.gmra.mxu1 %vm1601_vm12, %v2735_v6  ;;  %v1863_v61 = vmul.f32 %v1859_v57, %v3071_v0  ;;  %v2750_v25 = vld [vmem:[%s3758_s5 + $0x4] sm:$0xf] }
 0x452   : > { %v1913_v36 = vmul.f32 %v1908_v30, %v3089_v27  ;;  %v1914_v37 = vmul.f32 %v1910_v31, %v3092_v28  ;;  %v2144_v30 = vmul.f32 %v3203_v43, %v3027_v33  ;;  %v2147_v57 = vpack.c.bf16 %v2143_v55, %v2143_v55 }
 0x454   : > { %v1917_v49 = vpack.c.bf16 %v1913_v36, %v1911_v34  ;;  %v1918_v50 = vpack.c.bf16 %v1914_v37, %v1912_v35 }
 0x456   : > { %1929 = vmatpush.bf16.msra.mxu2 %v1917_v49  ;;  %1942 = vmatpush.bf16.msra.mxu3 %v1918_v50 }
 0x457   : > { %v1953_v38 = vpop.permute.xlu0 %1952 }
 0x458   : > { %v1853_v12 = vpop.permute.xlu1 %1852  ;;  %v1959_v23 = vsel %vm896_vm9, %v1953_v38, %v1957_v5 }
 0x459   : > { %v1856_v52 = vsel %vm792_vm7, %v3504_v7, %v1853_v12  ;;  %v1858_v53 = vsel %vm792_vm7, %v1853_v12, %v3504_v7  ;;  %2745 = vmatmul.msk.bf16.vlgmr.msra.gmra.mxu2 %vm1601_vm12, %v2744_v51  ;;  %2746 = vmatmul.msk.bf16.vlgmr.msra.gmra.mxu3 %vm1601_vm12, %v2744_v51  ;;  %v2741_v7 = vld [vmem:[%s3757_s4 + $0x18] sm:$0xf]  ;;  %v1964_v31 = vmul.f32 %v1959_v23, %v3126_v46 }
 0x45a   : > { %v1860_v62 = vmul.f32 %v1856_v52, %v3068_v63  ;;  %v1861_v1 = vmul.f32 %v1858_v53, %v3071_v0  ;;  %v2747_v52 = vld [vmem:[%s3757_s4 + $0x20] sm:$0xf] }
 0x45c   : > { %v1866_v29 = vpack.c.bf16 %v1862_v58, %v1860_v62  ;;  %v1867_v2 = vpack.c.bf16 %v1863_v61, %v1861_v1  ;;  %v2153_v62 = vsel %vm523_vm3, %v2147_v57, 0  ;;  %v2758_v57 = vld [vmem:[%s3758_s5 + $0xc] sm:$0xf] }
 0x45e   : > { %1878 = vmatpush.bf16.msra.mxu0 %v1866_v29  ;;  %1891 = vmatpush.bf16.msra.mxu1 %v1867_v2 }
 0x45f   : > { %v2095_v8 = vpop.permute.xlu0 %2094 }
 0x460   : > { %v2015_v9 = vpop.permute.xlu1 %2014 }
 0x461   : > { %v2016_v26 = vsel %vm508_vm2, %v2013_v24, %v2015_v9  ;;  %v2017_v39 = vsel %vm508_vm2, %v2015_v9, %v2013_v24  ;;  %2742 = vmatmul.msk.bf16.vlgmr.msra.gmra.mxu0 %vm1601_vm12, %v2741_v7  ;;  %2743 = vmatmul.msk.bf16.vlgmr.msra.gmra.mxu1 %vm1601_vm12, %v2741_v7  ;;  %v2002_v24 = vpop.permute.xlu2 %2001  ;;  %v2189_v7 = vpack.c.bf16 %v3169_v22, %v3169_v22 }
 0x462   : > { %v2018_v14 = vmul.f32 %v2017_v39, %v2999_v16  ;;  %v2019_v40 = vmul.f32 %v2016_v26, %v3002_v17  ;;  %v1961_v16 = vsel %vm896_vm9, %v1957_v5, %v1953_v38  ;;  %v2188_v5 = vpack.c.bf16 %v3167_v21, %v3167_v21 }
 0x463   : > { %v1965_v33 = vmul.f32 %v1961_v16, %v3129_v47  ;;  %v2197_v39 = vsel %vm523_vm3, %v2189_v7, 0 }
 0x464   : > { %v2022_v15 = vpack.c.bf16 %v2018_v14, %v2018_v14  ;;  %v2023_v20 = vpack.c.bf16 %v2019_v40, %v2019_v40  ;;  %v2755_v14 = vld [vmem:[%s3758_s5 + $0x8] sm:$0xf]  ;;  %v2227_v40 = vmul.f32 %v3195_v41, %v3059_v59 }
 0x466   : > { %v2028_v6 = vsel %vm523_vm3, %v2022_v15, 0  ;;  %v2031_v54 = vsel %vm523_vm3, %v2023_v20, 0  ;;  %v2231_v41 = vpack.c.bf16 %v2227_v40, %v2227_v40 }
 0x467   : > { %2040 = vmatpush.bf16.msrb.mxu2 %v2028_v6  ;;  %2053 = vmatpush.bf16.msrb.mxu3 %v2031_v54  ;;  %v2004_v17 = vpop.permute.xlu0 %2003  ;;  %v3770_v6 = vld [vmem:[#allocation2_spill] sm:$0xff] }
 0x468   : > { %v2005_v34 = vsel %vm494_vm1, %v2002_v24, %v2004_v17  ;;  %v2006_v32 = vsel %vm494_vm1, %v2004_v17, %v2002_v24  ;;  %v1955_v44 = vpop.permute.xlu1 %1954  ;;  %v2228_v54 = vmul.f32 %v3770_v6, %v3062_v60  ;;  %v2009_v60 = vld [vmem:[%s3758_s5] sm:$0xf] }
 0x469   : > { %v2007_v35 = vmul.f32 %v2006_v32, %v3005_v18  ;;  %v2008_v36 = vmul.f32 %v2005_v34, %v3008_v19  ;;  %v1958_v37 = vsel %vm896_vm9, %v1951_v48, %v1955_v44  ;;  %v1960_v49 = vsel %vm896_vm9, %v1955_v44, %v1951_v48  ;;  %v2273_v21 = vpop.permute.xlu2 %2272 }
 0x46a   : > { %v1962_v43 = vmul.f32 %v1958_v37, %v3126_v46  ;;  %v1963_v50 = vmul.f32 %v1960_v49, %v3129_v47  ;;  %2751 = vmatmul.msk.bf16.vlgmr.msrb.gmra.mxu2 %vm519_vm5, %v2750_v25  ;;  %2752 = vmatmul.msk.bf16.vlgmr.msrb.gmra.mxu3 %vm519_vm5, %v2750_v25  ;;  %v2148_v48 = vpack.c.bf16 %v2144_v30, %v2144_v30  ;;  %v2237_v34 = vsel %vm523_vm3, %v2231_v41, 0 }
 0x46b   : > { %v2010_v51 = vpack.c.bf16 %v2007_v35, %v2007_v35  ;;  %v2011_v18 = vpack.c.bf16 %v2008_v36, %v2008_v36  ;;  %v2232_v17 = vpack.c.bf16 %v2228_v54, %v2228_v54 }
 0x46c   : > { %v1968_v56 = vpack.c.bf16 %v1964_v31, %v1962_v43  ;;  %v1969_v19 = vpack.c.bf16 %v1965_v33, %v1963_v50  ;;  %v2156_v2 = vsel %vm523_vm3, %v2148_v48, 0 }
 0x46d   : > { %v2063_v38 = vsel %vm523_vm3, %v2010_v51, 0  ;;  %v2066_v12 = vsel %vm523_vm3, %v2011_v18, 0  ;;  %v2240_v35 = vsel %vm523_vm3, %v2232_v17, 0 }
 0x46e   : > { %1980 = vmatpush.bf16.msrb.mxu0 %v1968_v56  ;;  %1993 = vmatpush.bf16.msrb.mxu1 %v1969_v19 }
 0x46f   : > { %v2369_v15 = vpop.permute.xlu0 %2368 }
 0x470   : > { %v2097_v53 = vpop.permute.xlu1 %2096 }
 0x471   : > { %v2098_v58 = vsel %vm595_vm0, %v2095_v8, %v2097_v53  ;;  %v2099_v61 = vsel %vm595_vm0, %v2097_v53, %v2095_v8  ;;  %2748 = vmatmul.msk.bf16.vlgmr.msrb.gmra.mxu0 %vm1601_vm12, %v2747_v52  ;;  %2749 = vmatmul.msk.bf16.vlgmr.msrb.gmra.mxu1 %vm1601_vm12, %v2747_v52  ;;  %v2320_v37 = vpop.permute.xlu2 %2319  ;;  %v2770_v53 = vld [vmem:[%s3758_s5 + $0x1c] sm:$0xf]  ;;  %vm2530_vm0 = vcmask 3072  }
 0x472   : > { %2075 = vmatpush.bf16.msra.mxu0 %v2063_v38  ;;  %2088 = vmatpush.bf16.msra.mxu1 %v2066_v12  ;;  %v2100_v1 = vmul.f32 %v2099_v61, %v2985_v10  ;;  %v2101_v29 = vmul.f32 %v2098_v58, %v2988_v11  ;;  %v2194_v11 = vsel %vm523_vm3, %v2188_v5, 0  ;;  %v2767_v38 = vld [vmem:[%s3758_s5 + $0x18] sm:$0xf]  ;;  %v2764_v12 = vld [vmem:[%s3758_s5 + $0x14] sm:$0xf] }
 0x474   : > { %v2104_v8 = vpack.c.bf16 %v2100_v1, %v2100_v1  ;;  %v2105_v9 = vpack.c.bf16 %v2101_v29, %v2101_v29 }
 0x476   : > { %2165 = vmatpush.bf16.msrb.mxu0 %v2153_v62  ;;  %2178 = vmatpush.bf16.msrb.mxu1 %v2156_v2  ;;  %v2110_v26 = vsel %vm523_vm3, %v2104_v8, 0  ;;  %v2113_v10 = vsel %vm523_vm3, %v2105_v9, 0  ;;  %v2479_v2 = vld [vmem:[%s3760_s7] sm:$0xf] }
 0x477   : > { %2122 = vmatpush.bf16.msra.mxu2 %v2110_v26  ;;  %2135 = vmatpush.bf16.msra.mxu3 %v2113_v10  ;;  %v2322_v36 = vpop.permute.xlu0 %2321 }
 0x478   : > { %v2271_v22 = vpop.permute.xlu1 %2270  ;;  %v2323_v49 = vsel %vm844_vm8, %v2320_v37, %v2322_v36  ;;  %v2324_v50 = vsel %vm844_vm8, %v2322_v36, %v2320_v37 }
 0x479   : > { %v2274_v20 = vsel %vm792_vm7, %v2271_v22, %v2273_v21  ;;  %v2275_v23 = vsel %vm792_vm7, %v2273_v21, %v2271_v22  ;;  %v2326_v51 = vmul.f32 %v2324_v50, %v3092_v28 }
 0x47a   : > { %v2276_v55 = vmul.f32 %v2274_v20, %v3068_v63  ;;  %v2277_v24 = vmul.f32 %v2275_v23, %v3071_v0  ;;  %2756 = vmatmul.msk.bf16.vlgmr.msra.gmra.mxu2 %vm519_vm5, %v2755_v14  ;;  %2757 = vmatmul.msk.bf16.vlgmr.msra.gmra.mxu3 %vm519_vm5, %v2755_v14 }
 0x47b   : > { %2206 = vmatpush.bf16.msrb.mxu2 %v2194_v11  ;;  %2219 = vmatpush.bf16.msrb.mxu3 %v2197_v39  ;;  %v2330_v19 = vpack.c.bf16 %v2326_v51, %v2326_v51 }
 0x47c   : > { %v2280_v16 = vpack.c.bf16 %v2276_v55, %v2276_v55  ;;  %v2281_v59 = vpack.c.bf16 %v2277_v24, %v2277_v24 }
 0x47d   : > { %v2338_v28 = vsel %vm523_vm3, %v2330_v19, 0 }
 0x47e   : > { %v2286_v25 = vsel %vm523_vm3, %v2280_v16, 0  ;;  %v2289_v30 = vsel %vm523_vm3, %v2281_v59, 0 }
 0x47f   : > { %2298 = vmatpush.bf16.msra.mxu2 %v2286_v25  ;;  %2311 = vmatpush.bf16.msra.mxu3 %v2289_v30 }
 0x480   : > { %v2371_v63 = vpop.permute.xlu1 %2370 }
 0x481   : > { %v2372_v0 = vsel %vm896_vm9, %v2369_v15, %v2371_v63  ;;  %v2373_v31 = vsel %vm896_vm9, %v2371_v63, %v2369_v15  ;;  %2753 = vmatmul.msk.bf16.vlgmr.msra.gmra.mxu0 %vm519_vm5, %v2009_v60  ;;  %2754 = vmatmul.msk.bf16.vlgmr.msra.gmra.mxu1 %vm519_vm5, %v2009_v60 }
 0x482   : > { %v2374_v32 = vmul.f32 %v2372_v0, %v3126_v46  ;;  %v2375_v44 = vmul.f32 %v2373_v31, %v3129_v47  ;;  %2249 = vmatpush.bf16.msra.mxu0 %v2237_v34  ;;  %2262 = vmatpush.bf16.msra.mxu1 %v2240_v35  ;;  %v2761_v46 = vld [vmem:[%s3758_s5 + $0x10] sm:$0xf]  ;;  %v2325_v47 = vmul.f32 %v2323_v49, %v3089_v27 }
 0x484   : > { %v2378_v33 = vpack.c.bf16 %v2374_v32, %v2374_v32  ;;  %v2379_v43 = vpack.c.bf16 %v2375_v44, %v2375_v44  ;;  %v2329_v4 = vpack.c.bf16 %v2325_v47, %v2325_v47 }
 0x486   : > { %v2384_v18 = vsel %vm523_vm3, %v2378_v33, 0  ;;  %v2387_v56 = vsel %vm523_vm3, %v2379_v43, 0  ;;  %v2335_v27 = vsel %vm523_vm3, %v2329_v4, 0 }
 0x48a   : > { %2762 = vmatmul.msk.bf16.vlgmr.msrb.gmra.mxu2 %vm519_vm5, %v2761_v46  ;;  %2763 = vmatmul.msk.bf16.vlgmr.msrb.gmra.mxu3 %vm519_vm5, %v2761_v46 }
 0x48b   : > { %2396 = vmatpush.bf16.msrb.mxu2 %v2384_v18  ;;  %2409 = vmatpush.bf16.msrb.mxu3 %v2387_v56 }
 0x491   : > { %2759 = vmatmul.msk.bf16.vlgmr.msrb.gmra.mxu0 %vm519_vm5, %v2758_v57  ;;  %2760 = vmatmul.msk.bf16.vlgmr.msrb.gmra.mxu1 %vm519_vm5, %v2758_v57 }
 0x492   : > { %2347 = vmatpush.bf16.msrb.mxu0 %v2335_v27  ;;  %2360 = vmatpush.bf16.msrb.mxu1 %v2338_v28 }
 0x49a   : > { %2768 = vmatmul.msk.bf16.vlgmr.msra.gmra.mxu2 %vm519_vm5, %v2767_v38  ;;  %2769 = vmatmul.msk.bf16.vlgmr.msra.gmra.mxu3 %vm519_vm5, %v2767_v38 }
 0x49b   : > { %2497 = vmatpush.msra.mxu2 %v3364_v3  ;;  %2517 = vmatpush.msra.mxu3 %v3366_v13  ;;  %v2773_v3 = vld [vmem:[%s3758_s5 + $0x20] sm:$0xf] }
 0x49d   : > { %2498 = vmatpush.msra.mxu2 %v3354_v45  ;;  %2518 = vmatpush.msra.mxu3 %v3356_v42 }
 0x4a1   : > { %2765 = vmatmul.msk.bf16.vlgmr.msra.gmra.mxu0 %vm519_vm5, %v2764_v12  ;;  %2766 = vmatmul.msk.bf16.vlgmr.msra.gmra.mxu1 %vm519_vm5, %v2764_v12 }
 0x4a4   : > { %v1643_v48 = vpop.f32.mrf.mxu2  ;;  %v1656_v52 = vpop.f32.mrf.mxu3 }
 0x4aa   : > { %2774 = vmatmul.msk.bf16.vlgmr.msrb.gmra.mxu2 %vm519_vm5, %v2773_v3  ;;  %2775 = vmatmul.msk.bf16.vlgmr.msrb.gmra.mxu3 %vm519_vm5, %v2773_v3 }
 0x4ac   : > { %v1645_v45 = vpop.f32.mrf.mxu2  ;;  %v1658_v42 = vpop.f32.mrf.mxu3 }
 0x4ae   : > { %v1614_v13 = vpop.f32.mrf.mxu0  ;;  %v1627_v61 = vpop.f32.mrf.mxu1 }
 0x4af   : > { %v1644_v58 = vadd.f32 %v1643_v48, %v1614_v13  ;;  %v1657_v62 = vadd.f32 %v1656_v52, %v1627_v61 }
 0x4b1   : > { %2771 = vmatmul.msk.bf16.vlgmr.msrb.gmra.mxu0 %vm519_vm5, %v2770_v53  ;;  %2772 = vmatmul.msk.bf16.vlgmr.msrb.gmra.mxu1 %vm519_vm5, %v2770_v53 }
 0x4b6   : > { %v1616_v1 = vpop.f32.mrf.mxu0  ;;  %v1629_v29 = vpop.f32.mrf.mxu1 }
 0x4ba   : > { %2778 = vmatmul.msk.f32.vlgmr.msra.gmra.mxu2 %vm1601_vm12, %v2479_v2  ;;  %2779 = vmatmul.msk.f32.vlgmr.msra.gmra.mxu3 %vm1601_vm12, %v2479_v2 }
 0x4bc   : > { %v1743_v5 = vpop.f32.mrf.mxu2  ;;  %v1756_v7 = vpop.f32.mrf.mxu3 }
 0x4be   : > { %v1692_v8 = vpop.f32.mrf.mxu0  ;;  %v1705_v26 = vpop.f32.mrf.mxu1 }
 0x4bf   : > { %v1709_v9 = vadd.f32 %v1692_v8, %v1644_v58  ;;  %v1710_v10 = vadd.f32 %v1705_v26, %v1657_v62 }
 0x4c1   : > { %v1760_v11 = vadd.f32 %v1743_v5, %v1709_v9  ;;  %v1761_v39 = vadd.f32 %v1756_v7, %v1710_v10 }
 0x4c4   : > { %v1745_v14 = vpop.f32.mrf.mxu2  ;;  %v1758_v21 = vpop.f32.mrf.mxu3 }
 0x4c6   : > { %v1694_v22 = vpop.f32.mrf.mxu0  ;;  %v1707_v40 = vpop.f32.mrf.mxu1 }
 0x4cc   : > { %v1829_v15 = vpop.f32.mrf.mxu2  ;;  %v1842_v20 = vpop.f32.mrf.mxu3 }
 0x4ce   : > { %v1778_v23 = vpop.f32.mrf.mxu0  ;;  %v1791_v54 = vpop.f32.mrf.mxu1 }
 0x4cf   : > { %v1795_v6 = vadd.f32 %v1778_v23, %v1760_v11  ;;  %v1796_v55 = vadd.f32 %v1791_v54, %v1761_v39 }
 0x4d1   : > { %v1846_v24 = vadd.f32 %v1829_v15, %v1795_v6  ;;  %v1847_v16 = vadd.f32 %v1842_v20, %v1796_v55 }
 0x4d4   : > { %v1831_v59 = vpop.f32.mrf.mxu2  ;;  %v1844_v41 = vpop.f32.mrf.mxu3 }
 0x4d6   : > { %v1780_v17 = vpop.f32.mrf.mxu0  ;;  %v1793_v25 = vpop.f32.mrf.mxu1 }
 0x4dc   : > { %v1931_v30 = vpop.f32.mrf.mxu2  ;;  %v1944_v60 = vpop.f32.mrf.mxu3 }
 0x4de   : > { %v1880_v63 = vpop.f32.mrf.mxu0  ;;  %v1893_v31 = vpop.f32.mrf.mxu1 }
 0x4df   : > { %v1897_v0 = vadd.f32 %v1880_v63, %v1846_v24  ;;  %v1898_v34 = vadd.f32 %v1893_v31, %v1847_v16 }
 0x4e1   : > { %v1948_v32 = vadd.f32 %v1931_v30, %v1897_v0  ;;  %v1949_v44 = vadd.f32 %v1944_v60, %v1898_v34  ;;  %v2423_v0 = vpop.permute.xlu1 %2422 }
 0x4e4   : > { %v1933_v35 = vpop.f32.mrf.mxu2  ;;  %v1946_v36 = vpop.f32.mrf.mxu3 }
 0x4e6   : > { %v1882_v37 = vpop.f32.mrf.mxu0  ;;  %v1895_v49 = vpop.f32.mrf.mxu1 }
 0x4ed   : > { %v2042_v33 = vpop.f32.mrf.mxu2  ;;  %v2055_v43 = vpop.f32.mrf.mxu3 }
 0x4ee   : > { %v1982_v50 = vpop.f32.mrf.mxu0  ;;  %v1995_v47 = vpop.f32.mrf.mxu1 }
 0x4ef   : > { %v1999_v46 = vadd.f32 %v1982_v50, %v1948_v32  ;;  %v2000_v51 = vadd.f32 %v1995_v47, %v1949_v44 }
 0x4f5   : > { %v2044_v18 = vpop.f32.mrf.mxu2  ;;  %v2057_v56 = vpop.f32.mrf.mxu3 }
 0x4f6   : > { %v1984_v4 = vpop.f32.mrf.mxu0  ;;  %v1997_v19 = vpop.f32.mrf.mxu1 }
 0x4fd   : > { %v2124_v57 = vpop.f32.mrf.mxu2  ;;  %v2137_v27 = vpop.f32.mrf.mxu3 }
 0x4fe   : > { %v2077_v28 = vpop.f32.mrf.mxu0  ;;  %v2090_v38 = vpop.f32.mrf.mxu1 }
 0x4ff   : > { %v2078_v29 = vadd.f32 %v2077_v28, %v2042_v33  ;;  %v2091_v7 = vadd.f32 %v2090_v38, %v2055_v43 }
 0x501   : > { %v2141_v26 = vadd.f32 %v2124_v57, %v2078_v29  ;;  %v2142_v10 = vadd.f32 %v2137_v27, %v2091_v7  ;;  %v2528_v27 = vld [vmem:[%s3765_s12] sm:$0xf] }
 0x505   : > { %v2126_v12 = vpop.f32.mrf.mxu2  ;;  %v2139_v48 = vpop.f32.mrf.mxu3 }
 0x506   : > { %v2079_v52 = vpop.f32.mrf.mxu0  ;;  %v2092_v3 = vpop.f32.mrf.mxu1 }
 0x507   : > { %v2436_v48 = vpop.permute.xlu2 %2435 }
 0x50d   : > { %v2208_v45 = vpop.f32.mrf.mxu2  ;;  %v2221_v42 = vpop.f32.mrf.mxu3 }
 0x50e   : > { %v2167_v13 = vpop.f32.mrf.mxu0  ;;  %v2180_v53 = vpop.f32.mrf.mxu1 }
 0x50f   : > { %v2184_v11 = vadd.f32 %v2167_v13, %v2141_v26  ;;  %v2185_v39 = vadd.f32 %v2180_v53, %v2142_v10 }
 0x511   : > { %v2225_v40 = vadd.f32 %v2208_v45, %v2184_v11  ;;  %v2226_v20 = vadd.f32 %v2221_v42, %v2185_v39 }
 0x515   : > { %v2210_v58 = vpop.f32.mrf.mxu2  ;;  %v2223_v61 = vpop.f32.mrf.mxu3 }
 0x516   : > { %v2169_v62 = vpop.f32.mrf.mxu0  ;;  %v2182_v1 = vpop.f32.mrf.mxu1 }
 0x51d   : > { %v2300_v2 = vpop.f32.mrf.mxu2  ;;  %v2313_v5 = vpop.f32.mrf.mxu3 }
 0x51e   : > { %v2251_v8 = vpop.f32.mrf.mxu0  ;;  %v2264_v9 = vpop.f32.mrf.mxu1 }
 0x51f   : > { %v2268_v23 = vadd.f32 %v2251_v8, %v2225_v40  ;;  %v2269_v6 = vadd.f32 %v2264_v9, %v2226_v20 }
 0x521   : > { %v2317_v24 = vadd.f32 %v2300_v2, %v2268_v23  ;;  %v2318_v59 = vadd.f32 %v2313_v5, %v2269_v6 }
 0x525   : > { %v2302_v14 = vpop.f32.mrf.mxu2  ;;  %v2315_v21 = vpop.f32.mrf.mxu3 }
 0x526   : > { %v2253_v22 = vpop.f32.mrf.mxu0  ;;  %v2266_v15 = vpop.f32.mrf.mxu1 }
 0x52d   : > { %v2398_v54 = vpop.f32.mrf.mxu2  ;;  %v2411_v55 = vpop.f32.mrf.mxu3 }
 0x52e   : > { %v2349_v16 = vpop.f32.mrf.mxu0  ;;  %v2362_v17 = vpop.f32.mrf.mxu1 }
 0x52f   : > { %v2366_v41 = vadd.f32 %v2349_v16, %v2317_v24  ;;  %v2367_v25 = vadd.f32 %v2362_v17, %v2318_v59 }
 0x531   : > { %v2415_v30 = vadd.f32 %v2398_v54, %v2366_v41  ;;  %v2416_v60 = vadd.f32 %v2411_v55, %v2367_v25 }
 0x533   : > { %v2417_v63 = vadd.f32 %v2415_v30, %v1999_v46  ;;  %v2418_v31 = vadd.f32 %v2416_v60, %v2000_v51  ;;  %v2429_v46 = vld [vmem:[%s3759_s6] sm:$0x3] }
 0x535   : > { %v2400_v34 = vpop.f32.mrf.mxu2  ;;  %v2413_v32 = vpop.f32.mrf.mxu3  ;;  %v2425_v44 = vadd.f32 %v2423_v0, %v2417_v63  ;;  %v2426_v36 = vadd.f32 %v2423_v0, %v2418_v31 }
 0x536   : > { %v2351_v35 = vpop.f32.mrf.mxu0  ;;  %v2364_v37 = vpop.f32.mrf.mxu1 }
 0x537   : > { %v2427_v49 = vmax.f32 %v2425_v44, 0.0  ;;  %v2428_v33 = vmax.f32 %v2426_v36, 0.0 }
 0x539   : > { %v2430_v43 = vpack.c.bf16 %v2427_v49, %v2427_v49  ;;  %v2431_v50 = vpack.c.bf16 %v2428_v33, %v2428_v33 }
 0x53b   : > { %v2442_v47 = vsel %vm523_vm3, %v2430_v43, 0  ;;  %v2445_v18 = vsel %vm523_vm3, %v2431_v50, 0 }
 0x53c   : > { %2454 = vmatpush.bf16.msra.mxu0 %v2442_v47  ;;  %2467 = vmatpush.bf16.msra.mxu1 %v2445_v18 }
 0x53d   : > { %v2500_v51 = vpop.f32.mrf.mxu2  ;;  %v2520_v56 = vpop.f32.mrf.mxu3 }
 0x53e   : > { %v2523_v4 = vsel %vm523_vm3, %v2500_v51, 0.0  ;;  %v2524_v19 = vsel %vm523_vm3, %v2520_v56, 0.0 }
 0x53f   : > { %2776 = vmatmul.msk.bf16.vlgmr.msra.gmra.mxu0 %vm519_vm5, %v2429_v46  ;;  %v2525_v57 = vadd.f32 %v2524_v19, %v2523_v4  ;;  %2777 = vmatmul.msk.bf16.vlgmr.msra.gmra.mxu1 %vm519_vm5, %v2429_v46 }
 0x541   : > { %2526 = vadd.xlane.f32.xlu0 %v2525_v57 }
 0x5b4   : > { %v2527_v28 = vpop.xlane.xlu0 %2526 }
 0x5b5   : > { %v2529_v38 = vadd.f32 %v2528_v27, %v2527_v28 }
 0x5b7   : > { %2531 = vst.msk [vmem:[%s473_s26] sm:$0xf] %vm2530_vm0, %v2529_v38 }
 0x5bc   : > { %v2456_v12 = vpop.f32.mrf.mxu0  ;;  %v2469_v52 = vpop.f32.mrf.mxu1 }
 0x5bd   : > { %v2470_v3 = vadd.f32 %v2469_v52, %v2436_v48  ;;  %v2457_v45 = vadd.f32 %v2456_v12, %v2436_v48 }
 0x5bf   : > { %v2475_v42 = vrot.slane %v2470_v3, 4 }
 0x5c1   : > { %v2476_v13 = vsel %vm523_vm3, %v2457_v45, %v2475_v42 }
 0x5c2   : > { %2478 = vst [vmem:[%s478_s18] sm:$0xff] %v2476_v13 }
 0x5c4   : > { %v2458_v53 = vpop.f32.mrf.mxu0  ;;  %v2471_v58 = vpop.f32.mrf.mxu1 }
 0x5c5 PF: > { %s25_s29 = sadd.s32 1, %s2827_s29  }
 0x5c6   : > { %p22_p4 = scmp.ge.s32.totalorder %s25_s29, 4  }
 0x5c8   :  { %24 = sbr.rel (!%p22_p4) target bundleno = 1 (0x1), region = 146 }

</bundles_post_ra>
